<compile_context>
chip_gen: v7x
topology: tpu7x:2x2x1
jax: 0.10.0
libtpu: 0.0.40
codegen_flags: <defaults>
</compile_context>

<pallas_src>
import jax
import jax.numpy as jnp
from jax import lax
from jax.experimental import pallas as pl
from jax.experimental.pallas import tpu as pltpu


def pam_flash_kernel(xq_ref, xk_ref, wq_ref, bq_ref, wk_ref, bk_ref, wv_ref,
                     bv_ref, gamma_ref, out_ref, q_scr, m_scr, l_scr, acc_scr):
    """Refs:
      xq_ref : (C, tq)  f32   query-side slab of x (block of the (B, C, N) input)
      xk_ref : (C, tk)  f32   key/value-side slab of x
      wq_ref : (C, C8p) bf16  Wq^T, zero-padded to C8p >= 128
      bq_ref : (1, C8p) f32
      wk_ref : (C8p, C) bf16  Wk (padded), used as matmul LHS
      bk_ref : (C8p, 1) f32
      wv_ref : (C, C)   bf16  Wv, used as matmul LHS
      bv_ref : (C, 1)   f32
      gamma  : (1,)     f32   scalar in SMEM
      out_ref: (C, tq)  f32   lane-dense output block of the (B, C, N) result
      scratch: q_scr (tq, C8p) bf16 | m_scr, l_scr (tq, 1) f32 | acc_scr (tq, C) f32
    """
    ki = pl.program_id(2)
    nk = pl.num_programs(2)

    # --- once per (batch, query tile): project q and reset online-softmax state -----
    @pl.when(ki == 0)
    def _init():
        xq_t = xq_ref[...].T                                   # (tq, C) f32, single transpose
        q = jnp.dot(xq_t.astype(jnp.bfloat16), wq_ref[...],
                    preferred_element_type=jnp.float32) + bq_ref[...]      # (tq, C8p)
        q_scr[...] = q.astype(jnp.bfloat16)
        m_scr[...] = jnp.full_like(m_scr, -jnp.inf)
        l_scr[...] = jnp.zeros_like(l_scr)
        acc_scr[...] = jnp.zeros_like(acc_scr)

    # --- per kv tile: project k, v (weights as LHS keep the pixel axis lane-dense) ---
    xk = xk_ref[...].astype(jnp.bfloat16)                                  # (C, tk)
    k_ct = jnp.dot(wk_ref[...], xk,
                   preferred_element_type=jnp.float32) + bk_ref[...]       # (C8p, tk)
    v_ct = jnp.dot(wv_ref[...], xk,
                   preferred_element_type=jnp.float32) + bv_ref[...]       # (C,  tk)

    # energy tile: (tq, C8p) @ (C8p, tk) -> (tq, tk); contraction dim padded to >= 128
    s = jnp.dot(q_scr[...], k_ct.astype(jnp.bfloat16),
                preferred_element_type=jnp.float32)                        # (tq, tk) f32

    # --- online softmax over the key axis --------------------------------------------
    m_prev = m_scr[...]
    m_new = jnp.maximum(m_prev, jnp.max(s, axis=-1, keepdims=True))        # (tq, 1)
    alpha = jnp.exp(m_prev - m_new)
    p = jnp.exp(s - m_new)                                                 # (tq, tk) f32
    l_scr[...] = alpha * l_scr[...] + jnp.sum(p, axis=-1, keepdims=True)
    # acc += p @ v^T  (contract tk of both operands; transpose absorbed by the MXU)
    acc_scr[...] = alpha * acc_scr[...] + lax.dot_general(
        p.astype(jnp.bfloat16), v_ct.astype(jnp.bfloat16),
        (((1,), (1,)), ((), ())), preferred_element_type=jnp.float32)      # (tq, C)
    m_scr[...] = m_new

    # --- once per (batch, query tile): normalize, gamma-scale, residual, store -------
    @pl.when(ki == nk - 1)
    def _finalize():
        inv_l = pl.reciprocal(l_scr[...], approx=True)                     # EUP vrcp (free slot)
        o = acc_scr[...] * inv_l                                           # (tq, C) f32
        out_ref[...] = gamma_ref[0] * o.T + xq_ref[...]                    # (C, tq), lane-dense


def _pick_tile(n, want):
    if want is not None and n % want == 0:
        return want
    for t in (512, 256, 128):
        if n % t == 0:
            return t
    # TODO(synk): pad + mask the key axis for H*W not divisible by 128; for now fall
    # back to a single full-N tile (still correct, but loses the flash tiling).
    return n


def pam_module(x_nchw, wq, bq, wk, bk, wv, bv, gamma, *, tq=None, tk=None):
    """Position-attention forward.  x_nchw: (B, C, H, W) f32; wq/wk: (C//8, C); wv: (C, C)."""
    B, C, H, W = x_nchw.shape
    N = H * W
    C8 = wq.shape[0]
    C8p = max(128, ((C8 + 127) // 128) * 128)   # pad energy contraction dim to >= 128

    tq = _pick_tile(N, tq)
    tk = _pick_tile(N, tk)
    nq, nk = N // tq, N // tk

    x_flat = x_nchw.reshape(B, C, N)            # free reshape, no HBM transpose

    f32 = jnp.float32
    wq_p = jnp.zeros((C8p, C), f32).at[:C8].set(wq.astype(f32))
    wk_p = jnp.zeros((C8p, C), f32).at[:C8].set(wk.astype(f32))
    bq_p = jnp.zeros((C8p,), f32).at[:C8].set(bq.astype(f32))
    bk_p = jnp.zeros((C8p,), f32).at[:C8].set(bk.astype(f32))

    wq_t = wq_p.T.astype(jnp.bfloat16)          # (C, C8p)  RHS of x_q^T @ .
    wk_l = wk_p.astype(jnp.bfloat16)            # (C8p, C)  LHS of . @ x_k
    wv_l = wv.astype(jnp.bfloat16)              # (C, C)    LHS of . @ x_k
    bq2 = bq_p.reshape(1, C8p)
    bk2 = bk_p.reshape(C8p, 1)
    bv2 = bv.astype(f32).reshape(C, 1)
    gam = gamma.astype(f32).reshape(1)

    out_flat = pl.pallas_call(
        pam_flash_kernel,
        out_shape=jax.ShapeDtypeStruct((B, C, N), f32),
        grid_spec=pltpu.PrefetchScalarGridSpec(
            num_scalar_prefetch=0,
            grid=(B, nq, nk),
            in_specs=[
                pl.BlockSpec((pl.Squeezed(), C, tq), lambda b, qi, ki: (b, 0, qi)),  # x (query side)
                pl.BlockSpec((pl.Squeezed(), C, tk), lambda b, qi, ki: (b, 0, ki)),  # x (kv side)
                pl.BlockSpec((C, C8p), lambda b, qi, ki: (0, 0)),                    # Wq^T (bf16, padded)
                pl.BlockSpec((1, C8p), lambda b, qi, ki: (0, 0)),                    # bq
                pl.BlockSpec((C8p, C), lambda b, qi, ki: (0, 0)),                    # Wk   (bf16, padded)
                pl.BlockSpec((C8p, 1), lambda b, qi, ki: (0, 0)),                    # bk
                pl.BlockSpec((C, C), lambda b, qi, ki: (0, 0)),                      # Wv   (bf16)
                pl.BlockSpec((C, 1), lambda b, qi, ki: (0, 0)),                      # bv
                pl.BlockSpec(memory_space=pltpu.MemorySpace.SMEM),                   # gamma scalar
            ],
            out_specs=pl.BlockSpec((pl.Squeezed(), C, tq), lambda b, qi, ki: (b, 0, qi)),
            scratch_shapes=[
                pltpu.VMEM((tq, C8p), jnp.bfloat16),   # projected q tile
                pltpu.VMEM((tq, 1), f32),              # running max
                pltpu.VMEM((tq, 1), f32),              # running denom
                pltpu.VMEM((tq, C), f32),              # output accumulator
            ],
        ),
        compiler_params=pltpu.CompilerParams(
            dimension_semantics=("parallel", "parallel", "arbitrary")),
    )(x_flat, x_flat, wq_t, bq2, wk_l, bk2, wv_l, bv2, gam)

    return out_flat.reshape(B, C, H, W)


def pam_reference(x_nchw, wq, bq, wk, bk, wv, bv, gamma):
    """Pure-JAX f32 reference matching the PyTorch forward exactly."""
    B, C, H, W = x_nchw.shape
    N = H * W
    x_flat = x_nchw.reshape(B, C, N)
    q = jnp.einsum('oc,bcn->bon', wq, x_flat) + bq[None, :, None]
    k = jnp.einsum('oc,bcn->bon', wk, x_flat) + bk[None, :, None]
    v = jnp.einsum('oc,bcn->bon', wv, x_flat) + bv[None, :, None]
    energy = jnp.einsum('bci,bcj->bij', q, k)
    attn = jax.nn.softmax(energy, axis=-1)
    out = jnp.einsum('bcj,bij->bci', v, attn)
    return gamma[0] * out.reshape(B, C, H, W) + x_nchw


if __name__ == "__main__":
    B, C, H, W = 2, 16, 16, 16      # N = 256 -> 2x2 (query, kv) tile grid with tq = tk = 128
    C8 = C // 8

    key = jax.random.PRNGKey(0)
    kx, kwq, kbq, kwk, kbk, kwv, kbv = jax.random.split(key, 7)

    x = jax.random.normal(kx, (B, C, H, W), dtype=jnp.float32)
    wq = jax.random.normal(kwq, (C8, C), dtype=jnp.float32) * 0.1
    bq = jax.random.normal(kbq, (C8,), dtype=jnp.float32) * 0.1
    wk = jax.random.normal(kwk, (C8, C), dtype=jnp.float32) * 0.1
    bk = jax.random.normal(kbk, (C8,), dtype=jnp.float32) * 0.1
    wv = jax.random.normal(kwv, (C, C), dtype=jnp.float32) * 0.1
    bv = jax.random.normal(kbv, (C,), dtype=jnp.float32) * 0.1
    # nn.Parameter(torch.zeros(1)) inits gamma to 0; use a nonzero value so the
    # self-test actually exercises the attention path, not just the residual add.
    gamma = jnp.array([0.75], dtype=jnp.float32)

    out = pam_module(x, wq, bq, wk, bk, wv, bv, gamma, tq=128, tk=128)
    out = jax.block_until_ready(out)

    ref = pam_reference(x, wq, bq, wk, bk, wv, bv, gamma)
    assert out.shape == (B, C, H, W)
    err = jnp.max(jnp.abs(out - ref))
    # bf16 MXU operands + approximate reciprocal -> relaxed (but still tight) tolerance
    assert jnp.allclose(out, ref, atol=2e-2, rtol=2e-2), f"mismatch vs reference, max|diff|={err}"

    print("KERNEL_OK")
</pallas_src>

<mosaic_0001>
module attributes {stable_mosaic.version = 11 : i64} {
  func.func @pam_flash_kernel(%arg0: i32, %arg1: i32, %arg2: i32, %arg3: memref<1x16x128xf32, #tpu.memory_space<vmem>>, %arg4: memref<1x16x128xf32, #tpu.memory_space<vmem>>, %arg5: memref<16x128xbf16, #tpu.memory_space<vmem>>, %arg6: memref<1x128xf32, #tpu.memory_space<vmem>>, %arg7: memref<128x16xbf16, #tpu.memory_space<vmem>>, %arg8: memref<128x1xf32, #tpu.memory_space<vmem>>, %arg9: memref<16x16xbf16, #tpu.memory_space<vmem>>, %arg10: memref<16x1xf32, #tpu.memory_space<vmem>>, %arg11: memref<1xf32, #tpu.memory_space<smem>>, %arg12: memref<1x16x128xf32, #tpu.memory_space<vmem>>, %arg13: memref<128x128xbf16, #tpu.memory_space<vmem>>, %arg14: memref<128x1xf32, #tpu.memory_space<vmem>>, %arg15: memref<128x1xf32, #tpu.memory_space<vmem>>, %arg16: memref<128x16xf32, #tpu.memory_space<vmem>>) attributes {dimension_semantics = [#tpu.dimension_semantics<parallel>, #tpu.dimension_semantics<parallel>, #tpu.dimension_semantics<arbitrary>], iteration_bounds = array<i64: 2, 2, 2>, scalar_prefetch = 0 : i64, scratch_operands = 4 : i64, tpu.core_type = #tpu.core_type<tc>, window_params = [{transform_indices = @transform_0, window_bounds = array<i64: 1, 16, 128>}, {transform_indices = @transform_1, window_bounds = array<i64: 1, 16, 128>}, {pipeline_mode = #tpu.pipeline_mode<synchronous>, transform_indices = @transform_2, window_bounds = array<i64: 16, 128>}, {pipeline_mode = #tpu.pipeline_mode<synchronous>, transform_indices = @transform_3, window_bounds = array<i64: 1, 128>}, {pipeline_mode = #tpu.pipeline_mode<synchronous>, transform_indices = @transform_4, window_bounds = array<i64: 128, 16>}, {pipeline_mode = #tpu.pipeline_mode<synchronous>, transform_indices = @transform_5, window_bounds = array<i64: 128, 1>}, {pipeline_mode = #tpu.pipeline_mode<synchronous>, transform_indices = @transform_6, window_bounds = array<i64: 16, 16>}, {pipeline_mode = #tpu.pipeline_mode<synchronous>, transform_indices = @transform_7, window_bounds = array<i64: 16, 1>}, {transform_indices = @transform_8, window_bounds = array<i64: 1>}, {transform_indices = @transform_9, window_bounds = array<i64: 1, 16, 128>}]} {
    %c0_i32 = arith.constant 0 : i32
    %0 = arith.cmpi eq, %arg2, %c0_i32 : i32
    %1 = arith.extui %0 : i1 to i32
    %c0_i32_0 = arith.constant 0 : i32
    %2 = arith.cmpi ne, %1, %c0_i32_0 : i32
    scf.if %2 {
      %c0_31 = arith.constant 0 : index
      %c0_32 = arith.constant 0 : index
      %c0_33 = arith.constant 0 : index
      %46 = vector.load %arg3[%c0_31, %c0_32, %c0_33] : memref<1x16x128xf32, #tpu.memory_space<vmem>>, vector<1x16x128xf32>
      %47 = vector.shape_cast %46 : vector<1x16x128xf32> to vector<16x128xf32>
      %48 = tpu.transpose %47, [1, 0] : vector<16x128xf32> -> vector<128x16xf32>
      %49 = arith.truncf %48 : vector<128x16xf32> to vector<128x16xbf16>
      %c0_34 = arith.constant 0 : index
      %c0_35 = arith.constant 0 : index
      %50 = vector.load %arg5[%c0_34, %c0_35] : memref<16x128xbf16, #tpu.memory_space<vmem>>, vector<16x128xbf16>
      %cst_36 = arith.constant dense<0.000000e+00> : vector<128x128xf32>
      %51 = tpu.matmul %49, %50, %cst_36 {dimension_numbers = #tpu.dot_dimension_numbers<[1], [0], [0], [1], [0, 0, 1, 1], [], []>} : vector<128x16xbf16>, vector<16x128xbf16>, vector<128x128xf32> -> vector<128x128xf32>
      %c0_37 = arith.constant 0 : index
      %c0_38 = arith.constant 0 : index
      %52 = vector.load %arg6[%c0_37, %c0_38] : memref<1x128xf32, #tpu.memory_space<vmem>>, vector<1x128xf32>
      %53 = vector.broadcast %52 : vector<1x128xf32> to vector<128x128xf32>
      %54 = arith.addf %51, %53 : vector<128x128xf32>
      %55 = arith.truncf %54 : vector<128x128xf32> to vector<128x128xbf16>
      %c0_39 = arith.constant 0 : index
      %c0_40 = arith.constant 0 : index
      %56 = vector.load %arg13[%c0_39, %c0_40] : memref<128x128xbf16, #tpu.memory_space<vmem>>, vector<128x128xbf16>
      tpu.vector_store %arg13[%c0_39, %c0_40], %55 {strides = array<i32>} : memref<128x128xbf16, #tpu.memory_space<vmem>>, vector<128x128xbf16>,
      %cst_41 = arith.constant 0xFF800000 : f32
      %57 = vector.broadcast %cst_41 : f32 to vector<128x1xf32>
      %c0_42 = arith.constant 0 : index
      %c0_43 = arith.constant 0 : index
      %58 = vector.load %arg14[%c0_42, %c0_43] : memref<128x1xf32, #tpu.memory_space<vmem>>, vector<128x1xf32>
      tpu.vector_store %arg14[%c0_42, %c0_43], %57 {strides = array<i32>} : memref<128x1xf32, #tpu.memory_space<vmem>>, vector<128x1xf32>,
      %cst_44 = arith.constant 0.000000e+00 : f32
      %59 = vector.broadcast %cst_44 : f32 to vector<128x1xf32>
      %c0_45 = arith.constant 0 : index
      %c0_46 = arith.constant 0 : index
      %60 = vector.load %arg15[%c0_45, %c0_46] : memref<128x1xf32, #tpu.memory_space<vmem>>, vector<128x1xf32>
      tpu.vector_store %arg15[%c0_45, %c0_46], %59 {strides = array<i32>} : memref<128x1xf32, #tpu.memory_space<vmem>>, vector<128x1xf32>,
      %cst_47 = arith.constant 0.000000e+00 : f32
      %61 = vector.broadcast %cst_47 : f32 to vector<128x16xf32>
      %c0_48 = arith.constant 0 : index
      %c0_49 = arith.constant 0 : index
      %62 = vector.load %arg16[%c0_48, %c0_49] : memref<128x16xf32, #tpu.memory_space<vmem>>, vector<128x16xf32>
      tpu.vector_store %arg16[%c0_48, %c0_49], %61 {strides = array<i32>} : memref<128x16xf32, #tpu.memory_space<vmem>>, vector<128x16xf32>,
    } else {
    }
    %c0 = arith.constant 0 : index
    %c0_1 = arith.constant 0 : index
    %c0_2 = arith.constant 0 : index
    %3 = vector.load %arg4[%c0, %c0_1, %c0_2] : memref<1x16x128xf32, #tpu.memory_space<vmem>>, vector<1x16x128xf32>
    %4 = vector.shape_cast %3 : vector<1x16x128xf32> to vector<16x128xf32>
    %5 = arith.truncf %4 : vector<16x128xf32> to vector<16x128xbf16>
    %c0_3 = arith.constant 0 : index
    %c0_4 = arith.constant 0 : index
    %6 = vector.load %arg7[%c0_3, %c0_4] : memref<128x16xbf16, #tpu.memory_space<vmem>>, vector<128x16xbf16>
    %cst = arith.constant dense<0.000000e+00> : vector<128x128xf32>
    %7 = tpu.matmul %6, %5, %cst {dimension_numbers = #tpu.dot_dimension_numbers<[1], [0], [0], [1], [0, 0, 1, 1], [], []>} : vector<128x16xbf16>, vector<16x128xbf16>, vector<128x128xf32> -> vector<128x128xf32>
    %c0_5 = arith.constant 0 : index
    %c0_6 = arith.constant 0 : index
    %8 = vector.load %arg8[%c0_5, %c0_6] : memref<128x1xf32, #tpu.memory_space<vmem>>, vector<128x1xf32>
    %9 = vector.broadcast %8 : vector<128x1xf32> to vector<128x128xf32>
    %10 = arith.addf %7, %9 : vector<128x128xf32>
    %c0_7 = arith.constant 0 : index
    %c0_8 = arith.constant 0 : index
    %11 = vector.load %arg9[%c0_7, %c0_8] : memref<16x16xbf16, #tpu.memory_space<vmem>>, vector<16x16xbf16>
    %cst_9 = arith.constant dense<0.000000e+00> : vector<16x128xf32>
    %12 = tpu.matmul %11, %5, %cst_9 {dimension_numbers = #tpu.dot_dimension_numbers<[1], [0], [0], [1], [0, 0, 1, 1], [], []>} : vector<16x16xbf16>, vector<16x128xbf16>, vector<16x128xf32> -> vector<16x128xf32>
    %c0_10 = arith.constant 0 : index
    %c0_11 = arith.constant 0 : index
    %13 = vector.load %arg10[%c0_10, %c0_11] : memref<16x1xf32, #tpu.memory_space<vmem>>, vector<16x1xf32>
    %14 = vector.broadcast %13 : vector<16x1xf32> to vector<16x128xf32>
    %15 = arith.addf %12, %14 : vector<16x128xf32>
    %c0_12 = arith.constant 0 : index
    %c0_13 = arith.constant 0 : index
    %16 = vector.load %arg13[%c0_12, %c0_13] : memref<128x128xbf16, #tpu.memory_space<vmem>>, vector<128x128xbf16>
    %17 = arith.truncf %10 : vector<128x128xf32> to vector<128x128xbf16>
    %cst_14 = arith.constant dense<0.000000e+00> : vector<128x128xf32>
    %18 = tpu.matmul %16, %17, %cst_14 {dimension_numbers = #tpu.dot_dimension_numbers<[1], [0], [0], [1], [0, 0, 1, 1], [], []>} : vector<128x128xbf16>, vector<128x128xbf16>, vector<128x128xf32> -> vector<128x128xf32>
    %c0_15 = arith.constant 0 : index
    %c0_16 = arith.constant 0 : index
    %19 = vector.load %arg14[%c0_15, %c0_16] : memref<128x1xf32, #tpu.memory_space<vmem>>, vector<128x1xf32>
    %cst_17 = arith.constant dense<0xFF800000> : vector<128xf32>
    %20 = vector.multi_reduction <maximumf>, %18, %cst_17 [1] : vector<128x128xf32> to vector<128xf32>
    %21 = vector.shape_cast %20 : vector<128xf32> to vector<128x1xf32>
    %22 = arith.maximumf %19, %21 : vector<128x1xf32>
    %23 = arith.subf %19, %22 : vector<128x1xf32>
    %24 = math.exp %23 : vector<128x1xf32>
    %25 = vector.broadcast %22 : vector<128x1xf32> to vector<128x128xf32>
    %26 = arith.subf %18, %25 : vector<128x128xf32>
    %27 = math.exp %26 : vector<128x128xf32>
    %c0_18 = arith.constant 0 : index
    %c0_19 = arith.constant 0 : index
    %28 = vector.load %arg15[%c0_18, %c0_19] : memref<128x1xf32, #tpu.memory_space<vmem>>, vector<128x1xf32>
    %29 = arith.mulf %24, %28 : vector<128x1xf32>
    %cst_20 = arith.constant dense<0.000000e+00> : vector<128xf32>
    %30 = vector.multi_reduction <add>, %27, %cst_20 [1] : vector<128x128xf32> to vector<128xf32>
    %31 = vector.shape_cast %30 : vector<128xf32> to vector<128x1xf32>
    %32 = arith.addf %29, %31 : vector<128x1xf32>
    %c0_21 = arith.constant 0 : index
    %c0_22 = arith.constant 0 : index
    %33 = vector.load %arg15[%c0_21, %c0_22] : memref<128x1xf32, #tpu.memory_space<vmem>>, vector<128x1xf32>
    tpu.vector_store %arg15[%c0_21, %c0_22], %32 {strides = array<i32>} : memref<128x1xf32, #tpu.memory_space<vmem>>, vector<128x1xf32>,
    %c0_23 = arith.constant 0 : index
    %c0_24 = arith.constant 0 : index
    %34 = vector.load %arg16[%c0_23, %c0_24] : memref<128x16xf32, #tpu.memory_space<vmem>>, vector<128x16xf32>
    %35 = vector.broadcast %24 : vector<128x1xf32> to vector<128x16xf32>
    %36 = arith.mulf %35, %34 : vector<128x16xf32>
    %37 = arith.truncf %27 : vector<128x128xf32> to vector<128x128xbf16>
    %38 = arith.truncf %15 : vector<16x128xf32> to vector<16x128xbf16>
    %cst_25 = arith.constant dense<0.000000e+00> : vector<128x16xf32>
    %39 = tpu.matmul %37, %38, %cst_25 {dimension_numbers = #tpu.dot_dimension_numbers<[1], [1], [0], [0], [0, 0, 1, 0], [], []>} : vector<128x128xbf16>, vector<16x128xbf16>, vector<128x16xf32> -> vector<128x16xf32>
    %40 = arith.addf %36, %39 : vector<128x16xf32>
    %c0_26 = arith.constant 0 : index
    %c0_27 = arith.constant 0 : index
    %41 = vector.load %arg16[%c0_26, %c0_27] : memref<128x16xf32, #tpu.memory_space<vmem>>, vector<128x16xf32>
    tpu.vector_store %arg16[%c0_26, %c0_27], %40 {strides = array<i32>} : memref<128x16xf32, #tpu.memory_space<vmem>>, vector<128x16xf32>,
    %c0_28 = arith.constant 0 : index
    %c0_29 = arith.constant 0 : index
    %42 = vector.load %arg14[%c0_28, %c0_29] : memref<128x1xf32, #tpu.memory_space<vmem>>, vector<128x1xf32>
    tpu.vector_store %arg14[%c0_28, %c0_29], %22 {strides = array<i32>} : memref<128x1xf32, #tpu.memory_space<vmem>>, vector<128x1xf32>,
    %c1_i32 = arith.constant 1 : i32
    %43 = arith.cmpi eq, %arg2, %c1_i32 : i32
    %44 = arith.extui %43 : i1 to i32
    %c0_i32_30 = arith.constant 0 : i32
    %45 = arith.cmpi ne, %44, %c0_i32_30 : i32
    scf.if %45 {
      %c0_31 = arith.constant 0 : index
      %c0_32 = arith.constant 0 : index
      %46 = vector.load %arg15[%c0_31, %c0_32] : memref<128x1xf32, #tpu.memory_space<vmem>>, vector<128x1xf32>
      %47 = tpu.reciprocal %46 {approx = true} : vector<128x1xf32> -> vector<128x1xf32>
      %c0_33 = arith.constant 0 : index
      %c0_34 = arith.constant 0 : index
      %48 = vector.load %arg16[%c0_33, %c0_34] : memref<128x16xf32, #tpu.memory_space<vmem>>, vector<128x16xf32>
      %49 = vector.broadcast %47 : vector<128x1xf32> to vector<128x16xf32>
      %50 = arith.mulf %48, %49 : vector<128x16xf32>
      %c0_35 = arith.constant 0 : index
      %51 = memref.load %arg11[%c0_35] : memref<1xf32, #tpu.memory_space<smem>>
      %52 = tpu.transpose %50, [1, 0] : vector<128x16xf32> -> vector<16x128xf32>
      %53 = vector.broadcast %51 : f32 to vector<16x128xf32>
      %54 = arith.mulf %53, %52 : vector<16x128xf32>
      %c0_36 = arith.constant 0 : index
      %c0_37 = arith.constant 0 : index
      %c0_38 = arith.constant 0 : index
      %55 = vector.load %arg3[%c0_36, %c0_37, %c0_38] : memref<1x16x128xf32, #tpu.memory_space<vmem>>, vector<1x16x128xf32>
      %56 = vector.shape_cast %55 : vector<1x16x128xf32> to vector<16x128xf32>
      %57 = arith.addf %54, %56 : vector<16x128xf32>
      %c0_39 = arith.constant 0 : index
      %c0_40 = arith.constant 0 : index
      %c0_41 = arith.constant 0 : index
      %58 = vector.load %arg12[%c0_39, %c0_40, %c0_41] : memref<1x16x128xf32, #tpu.memory_space<vmem>>, vector<1x16x128xf32>
      %59 = vector.shape_cast %58 : vector<1x16x128xf32> to vector<16x128xf32>
      %60 = vector.shape_cast %57 : vector<16x128xf32> to vector<1x16x128xf32>
      tpu.vector_store %arg12[%c0_39, %c0_40, %c0_41], %60 {strides = array<i32>} : memref<1x16x128xf32, #tpu.memory_space<vmem>>, vector<1x16x128xf32>,
    } else {
    }
    return
  }
  func.func @transform_0(%arg0: i32, %arg1: i32, %arg2: i32) -> (i32, i32, i32) {
    %c0_i32 = arith.constant 0 : i32
    %c0_i32_0 = arith.constant 0 : i32
    return %arg0, %c0_i32, %arg1 : i32, i32, i32
  }
  func.func @transform_1(%arg0: i32, %arg1: i32, %arg2: i32) -> (i32, i32, i32) {
    %c0_i32 = arith.constant 0 : i32
    %c0_i32_0 = arith.constant 0 : i32
    return %arg0, %c0_i32, %arg2 : i32, i32, i32
  }
  func.func @transform_2(%arg0: i32, %arg1: i32, %arg2: i32) -> (i32, i32) {
    %c0_i32 = arith.constant 0 : i32
    %c0_i32_0 = arith.constant 0 : i32
    %c0_i32_1 = arith.constant 0 : i32
    return %c0_i32, %c0_i32_0 : i32, i32
  }
  func.func @transform_3(%arg0: i32, %arg1: i32, %arg2: i32) -> (i32, i32) {
    %c0_i32 = arith.constant 0 : i32
    %c0_i32_0 = arith.constant 0 : i32
    %c0_i32_1 = arith.constant 0 : i32
    return %c0_i32, %c0_i32_0 : i32, i32
  }
  func.func @transform_4(%arg0: i32, %arg1: i32, %arg2: i32) -> (i32, i32) {
    %c0_i32 = arith.constant 0 : i32
    %c0_i32_0 = arith.constant 0 : i32
    %c0_i32_1 = arith.constant 0 : i32
    return %c0_i32, %c0_i32_0 : i32, i32
  }
  func.func @transform_5(%arg0: i32, %arg1: i32, %arg2: i32) -> (i32, i32) {
    %c0_i32 = arith.constant 0 : i32
    %c0_i32_0 = arith.constant 0 : i32
    %c0_i32_1 = arith.constant 0 : i32
    return %c0_i32, %c0_i32_0 : i32, i32
  }
  func.func @transform_6(%arg0: i32, %arg1: i32, %arg2: i32) -> (i32, i32) {
    %c0_i32 = arith.constant 0 : i32
    %c0_i32_0 = arith.constant 0 : i32
    %c0_i32_1 = arith.constant 0 : i32
    return %c0_i32, %c0_i32_0 : i32, i32
  }
  func.func @transform_7(%arg0: i32, %arg1: i32, %arg2: i32) -> (i32, i32) {
    %c0_i32 = arith.constant 0 : i32
    %c0_i32_0 = arith.constant 0 : i32
    %c0_i32_1 = arith.constant 0 : i32
    return %c0_i32, %c0_i32_0 : i32, i32
  }
  func.func @transform_8(%arg0: i32, %arg1: i32, %arg2: i32) -> i32 {
    %c0_i32 = arith.constant 0 : i32
    %c0_i32_0 = arith.constant 0 : i32
    return %c0_i32 : i32
  }
  func.func @transform_9(%arg0: i32, %arg1: i32, %arg2: i32) -> (i32, i32, i32) {
    %c0_i32 = arith.constant 0 : i32
    %c0_i32_0 = arith.constant 0 : i32
    return %arg0, %c0_i32, %arg1 : i32, i32, i32
  }
}

</mosaic_0001>

<bundles_post_ra>
// kernel: tpu_custom_call.1
= control target key start
LH: loop header
LB: loop body
LE: loop exit
PB: predicated region body
PF: predicated region fallthrough
CT: control target
= control target key end

     0   :  { %s3397_s0 = inlined_call_operand.vmem [shape: f32[2,16,256], index: 0, kind: input, shape index: {}]   ;;  %s3398_s1 = inlined_call_operand.vmem [shape: f32[2,16,256], index: 1, kind: input, shape index: {}]   ;;  %s3399_s2 = inlined_call_operand.vmem [shape: bf16[16,128], index: 2, kind: input, shape index: {}]   ;;  %s3400_s3 = inlined_call_operand.vmem [shape: f32[1,128], index: 3, kind: input, shape index: {}]   ;;  %s3401_s4 = inlined_call_operand.vmem [shape: bf16[128,16], index: 4, kind: input, shape index: {}]   ;;  %s3402_s5 = inlined_call_operand.vmem [shape: f32[128,1], index: 5, kind: input, shape index: {}]   ;;  %s3403_s6 = inlined_call_operand.vmem [shape: bf16[16,16], index: 6, kind: input, shape index: {}]   ;;  %s3404_s7 = inlined_call_operand.vmem [shape: f32[16,1], index: 7, kind: input, shape index: {}]   ;;  %s3405_s8 = inlined_call_operand.<no memory space> [shape: f32[1], index: 8, kind: input, shape index: {}]   ;;  %s3406_s9 = inlined_call_operand.hbm [shape: f32[2,16,256], index: 9, kind: output, shape index: {}]  }
   0x1   :  { %3415 = sst [smem:[#allocation20_spill]] %s3397_s0 }
   0x2   :  { %3416 = sst [smem:[#allocation21_spill]] %s3404_s7 }
   0x3   :  { %3417 = sst [smem:[#allocation22_spill]] %s3406_s9 }
   0x4   :  { %14 = sst [smem:[#allocation6]] %s3405_s8 }
   0x5   :  { %15 = vsyncpa [#allocation10], 0 }
   0x6   :  { %17 = vsyncpa [#allocation10 + $0x1], 0  ;;  %s2677_s11 = smov 0   ;;  %s2679_s12 = smov 0  }
   0x7   :  { %s2681_s13 = smov 0   ;;  %s2683_s14 = smov 0  }
   0x8   :  { %s2685_s15 = smov 0   ;;  %s2687_s16 = smov 0  }
   0x9   :  { %s2689_s17 = smov 0   ;;  %s2691_s18 = smov 0  }
   0xa   :  { %s2693_s19 = smov 0   ;;  %s2695_s8 = smov 0  }
   0xb   :  { %s2697_s20 = smov 0   ;;  %s2699_s21 = smov 0  }
   0xc LB: > { %3418 = sst [smem:[#allocation12_spill]] %s2568_s11  ;;  %s2076_s22 = sadd.s32 4294967295, %s2612_s21   ;;  %s2612_s21 = sphi %s2699_s21, %s23_s21   ;;  %s2608_s20 = sphi %s2697_s20, %s3450_s20   ;;  %s2604_s8 = sphi %s2695_s8, %s3440_s8   ;;  %s2600_s19 = sphi %s2693_s19, %s3449_s19   ;;  %s2596_s18 = sphi %s2691_s18, %s3448_s18   ;;  %s2592_s17 = sphi %s2689_s17, %s3438_s17   ;;  %s2588_s16 = sphi %s2687_s16, %s3447_s16   ;;  %s2584_s15 = sphi %s2685_s15, %s3446_s15   ;;  %s2580_s14 = sphi %s2683_s14, %s3445_s14   ;;  %s2576_s13 = sphi %s2681_s13, %s3444_s13   ;;  %s2572_s12 = sphi %s2679_s12, %s3443_s12   ;;  %s2568_s11 = sphi %s2677_s11, %s3442_s11  }
   0xd   : > { %3419 = sst [smem:[#allocation13_spill]] %s2592_s17  ;;  %s2077_s23 = sadd.s32 4294967294, %s2612_s21  }
   0xe   : > { %3420 = sst [smem:[#allocation14_spill]] %s2596_s18  ;;  %s35_s24 = sadd.s32 1, %s2600_s19 }
   0xf   : > { %3421 = sst [smem:[#allocation15_spill]] %s2604_s8  ;;  %p36_p0 = scmp.ge.s32.totalorder %s35_s24, 2 }
  0x10   : > { %s38_s25 = sadd.s32 1, %s2604_s8  ;;  %s42_s26 = sadd.s32 1, %s2608_s20 }
  0x11   : > { %p58_p1 = scmp.ne.s32.totalorder %s2584_s15, %s2580_s14  ;;  %s3452_s24 = smov (%p36_p0, %s35_s24), 0 }
  0x12   : > { %3422 = sst [smem:[#allocation16_spill]] %s3452_s24  ;;  %s3454_s25 = smov (!%p36_p0, %s38_s25), %s2604_s8 }
  0x13   : > { %s51_s27 = sadd.s32 1, %s2584_s15  ;;  %p59_p2 = scmp.eq.s32.totalorder %s2612_s21, 0 }
  0x14   : > { %p40_p3 = scmp.ge.s32.totalorder %s3454_s25, 2  ;;  %s75_s28 = ssub.s32 %s2600_s19, %s3452_s24 }
  0x15   : > { %p2754_p4 = por %p59_p2, %p58_p1  ;;  %p86_p5 = scmp.ne.s32.totalorder %s2576_s13, %s2572_s12 }
  0x16   : > { %s3456_s25 = smov (%p40_p3, %s3454_s25), 0  ;;  %s3458_s26 = smov (!%p40_p3, %s42_s26), %s2608_s20 }
  0x17   : > { %3424 = sst [smem:[#allocation17_spill]] %s3456_s25  ;;  %s47_s30 = ssub.s32 %s2604_s8, %s3456_s25 }
  0x18   : > { %p2765_p6 = por %p86_p5, %p59_p2  ;;  %p44_p7 = scmp.ge.s32.totalorder %s3458_s26, 2 }
  0x19   : > { %p265_p8 = scmp.eq.s32.totalorder %s2076_s22, 7  ;;  %p270_p9 = scmp.ne.s32.totalorder %s2580_s14, %s2568_s11 }
  0x1a   : > { %p271_p10 = scmp.eq.s32.totalorder %s2077_s23, 7  ;;  %s3460_s26 = smov (%p44_p7, %s3458_s26), 0 }
  0x1b   : > { %3426 = sst [smem:[#allocation18_spill]] %s3460_s26  ;;  %p2776_p11 = por %p265_p8, %p58_p1 }
  0x1c   : > { %p2780_p12 = por %p271_p10, %p270_p9  ;;  %s46_s25 = ssub.s32 %s2608_s20, %s3460_s26 }
  0x1d   : > { %s79_s17 = sadd.s32 1, %s2576_s13  ;;  %s48_s18 = sor.u32 %s47_s30, %s46_s25 }
  0x1e   : > { %s3428_s9 = scalar_select %p2780_p12, 1, 0 }
  0x1f   : > { %s76_s7 = sor.u32 %s75_s28, %s46_s25  ;;  %p49_p13 = scmp.eq.s32.totalorder %s48_s18, 0 }
  0x20   : > { %3429 = sst [smem:[#allocation19_spill]] %s3428_s9  ;;  %p77_p0 = scmp.eq.s32.totalorder %s76_s7, 0 }
  0x21   : > { %s2788_s22 = scalar_select %p49_p13, %s2584_s15, %s51_s27  }
  0x22   : > { %s2791_s23 = scalar_select %p77_p0, %s2576_s13, %s79_s17  }
  0x23   : > { %p2079_p2 = scmp.ge.s32.totalorder %s2612_s21, 8 }
  0x25   : > { %308 = sbr.rel (%p2079_p2) target bundleno = 62 (0x3e), region = 44 }
  0x2c   : > { %311 = sbr.rel (!%p2754_p4) target bundleno = 55 (0x37), region = 48  ;;  %s313_s9 = sand.u32 (%p2754_p4), 1, %s2584_s15  }
  0x2d   : > { %s2081_s26 = sshll.u32 (%p2754_p4), %s2608_s20, 2  ;;  %s2080_s11 = sshll.u32 (%p2754_p4), %s313_s9, 4 }
  0x2e   : > { %s317_s30 = sadd.s32 (%p2754_p4), %s2604_s8, %s2081_s26  ;;  %s3430_s0 = sld [smem:[#allocation20_spill]] (%p2754_p4) }
  0x2f   : > { %s2082_s25 = sshll.u32 (%p2754_p4), %s317_s30, 3  ;;  %s315_s17 = scalar_lea.vmem (%p2754_p4), [#allocation7], %s2080_s11 }
  0x34   : > { %s319_s27 = scalar_lea.vmem %s3430_s0, %s2082_s25 }
  0x35   : > { %v349_v0 = vld [vmem:[%s319_s27] sm:$0xff]  ;;  %v351_v1 = vld [vmem:[%s319_s27 + $0x10] sm:$0xff] }
  0x36   : > { %350 = vst [vmem:[%s315_s17] sm:$0xff] %v349_v0  ;;  %352 = vst [vmem:[%s315_s17 + $0x8] sm:$0xff] %v351_v1 }
  0x37 PF: > { %358 = sbr.rel (!%p2765_p6) target bundleno = 62 (0x3e), region = 86  ;;  %s360_s28 = sand.u32 (%p2765_p6), 1, %s2576_s13  }
  0x38   : > { %s2084_s9 = sshll.u32 (%p2765_p6), %s2608_s20, 2  ;;  %s2083_s26 = sshll.u32 (%p2765_p6), %s360_s28, 4 }
  0x39   : > { %s364_s29 = sadd.s32 (%p2765_p6), %s2600_s19, %s2084_s9  ;;  %s362_s11 = scalar_lea.vmem (%p2765_p6), [#allocation8], %s2083_s26 }
  0x3a   : > { %s2085_s30 = sshll.u32 (%p2765_p6), %s364_s29, 3 }
  0x3b   : > { %s366_s25 = scalar_lea.vmem (%p2765_p6), %s3398_s1, %s2085_s30 }
  0x3c   : > { %v396_v2 = vld [vmem:[%s366_s25] sm:$0xff] (%p2765_p6)  ;;  %v398_v3 = vld [vmem:[%s366_s25 + $0x10] sm:$0xff] (%p2765_p6) }
  0x3d   : > { %397 = vst [vmem:[%s362_s11] sm:$0xff] (%p2765_p6), %v396_v2  ;;  %399 = vst [vmem:[%s362_s11 + $0x8] sm:$0xff] (%p2765_p6), %v398_v3 }
  0x3e PF: > { %p2086_p1 = scmp.ge.s32.totalorder %s2612_s21, 1  ;;  %p404_p3 = scmp.lt.s32.totalorder %s2612_s21, 9 }
  0x40   : > { %p405_p4 = pnand %p2086_p1, %p404_p3 }
  0x41   : > { %s411_s10 = sand.u32 (!%p405_p4), 1, %s2580_s14   ;;  %s418_s7 = sand.u32 (!%p405_p4), 1, %s2572_s12  }
  0x42   : > { %408 = sbr.rel (%p405_p4) target bundleno = 1780 (0x6f4), region = 124  ;;  %s2087_s8 = sshll.u32 (!%p405_p4), %s411_s10, 4 }
  0x43   : > { %s2816_s27 = sshll.u32 (!%p405_p4), %s418_s7, 4  ;;  %s2818_s17 = scalar_lea.vmem (!%p405_p4), [#allocation7], %s2087_s8 }
  0x44   : > { %s420_s28 = scalar_lea.vmem (!%p405_p4), [#allocation8], %s2816_s27  ;;  %s2821_s9 = scalar_lea.vmem (!%p405_p4), [#allocation9], %s2087_s8 }
  0x45   : > { %p2090_p5 = scmp.ne.s32.totalorder (!%p405_p4), %s2588_s16, 0 }
  0x49   : > { %461 = sbr.rel (%p2090_p5) target bundleno = 485 (0x1e5), region = 136  ;;  %v462_v4 = vld [vmem:[%s2818_s17] sm:$0xff] (!%p2090_p5)  ;;  %v463_v5 = vld [vmem:[%s2818_s17 + $0x8] sm:$0xff] (!%p2090_p5)  ;;  %vm519_vm0 = vcmask (!%p2090_p5), 130048   ;;  %v2614_v6 = vmov (!%p2090_p5), 0.0   ;;  %vm657_vm1 = vcmask (!%p2090_p5), 7168  }
  0x4a   : > { %464 = vxpose.xlu0.b32.start [1/2] (short) (!%p2090_p5), %v462_v4, 128  ;;  %690 = vst.msk [vmem:[#allocation5] sm:$0xff] (!%p2090_p5), %vm519_vm0, %v2614_v6  ;;  %691 = vst.msk [vmem:[#allocation5 + $0x8] sm:$0xff] (!%p2090_p5), %vm519_vm0, %v2614_v6  ;;  %v2615_v7 = vmov (!%p2090_p5), -inf   ;;  %v2376_v8 = vld [vmem:[%s3399_s2] sm:$0xff] (!%p2090_p5)  }
  0x4b   : > { %692 = vst.msk [vmem:[#allocation5 + $0x10] sm:$0xff] (!%p2090_p5), %vm519_vm0, %v2614_v6  ;;  %693 = vst.msk [vmem:[#allocation5 + $0x18] sm:$0xff] (!%p2090_p5), %vm519_vm0, %v2614_v6  ;;  %2170 = vmatprep.subr.bf16.mxu0 (!%p2090_p5), %v2376_v8  ;;  %2262 = vmatprep.subr.bf16.mxu1 (!%p2090_p5), %v2376_v8  ;;  %v2091_v34 = vld [vmem:[%s3400_s3] ss:$0 sm:$0xff] (!%p2090_p5) }
  0x4c   : > { %694 = vst.msk [vmem:[#allocation5 + $0x20] sm:$0xff] (!%p2090_p5), %vm519_vm0, %v2614_v6  ;;  %695 = vst.msk [vmem:[#allocation5 + $0x28] sm:$0xff] (!%p2090_p5), %vm519_vm0, %v2614_v6  ;;  %2171 = vmatpush3.bf16.msra.mxu0 (!%p2090_p5), %v2376_v8  ;;  %2263 = vmatpush3.bf16.msra.mxu1 (!%p2090_p5), %v2376_v8 }
  0x4d   : > { %696 = vst.msk [vmem:[#allocation5 + $0x30] sm:$0xff] (!%p2090_p5), %vm519_vm0, %v2614_v6  ;;  %697 = vst.msk [vmem:[#allocation5 + $0x38] sm:$0xff] (!%p2090_p5), %vm519_vm0, %v2614_v6 }
  0x4e   : > { %465 = vxpose.xlu0.b32.end [2/2] (short) (!%p2090_p5), %v463_v5, 128  ;;  %698 = vst.msk [vmem:[#allocation5 + $0x40] sm:$0xff] (!%p2090_p5), %vm519_vm0, %v2614_v6  ;;  %699 = vst.msk [vmem:[#allocation5 + $0x48] sm:$0xff] (!%p2090_p5), %vm519_vm0, %v2614_v6 }
  0x4f   : > { %700 = vst.msk [vmem:[#allocation5 + $0x50] sm:$0xff] (!%p2090_p5), %vm519_vm0, %v2614_v6  ;;  %701 = vst.msk [vmem:[#allocation5 + $0x58] sm:$0xff] (!%p2090_p5), %vm519_vm0, %v2614_v6 }
  0x50   : > { %702 = vst.msk [vmem:[#allocation5 + $0x60] sm:$0xff] %vm519_vm0, %v2614_v6  ;;  %703 = vst.msk [vmem:[#allocation5 + $0x68] sm:$0xff] %vm519_vm0, %v2614_v6 }
  0x51   : > { %704 = vst.msk [vmem:[#allocation5 + $0x70] sm:$0xff] %vm519_vm0, %v2614_v6  ;;  %705 = vst.msk [vmem:[#allocation5 + $0x78] sm:$0xff] %vm519_vm0, %v2614_v6 }
  0x52   : > { %658 = vst.msk [vmem:[#allocation3] sm:$0xff] %vm657_vm1, %v2615_v7  ;;  %659 = vst.msk [vmem:[#allocation3 + $0x8] sm:$0xff] %vm657_vm1, %v2615_v7 }
  0x53   : > { %660 = vst.msk [vmem:[#allocation3 + $0x10] sm:$0xff] %vm657_vm1, %v2615_v7  ;;  %661 = vst.msk [vmem:[#allocation3 + $0x18] sm:$0xff] %vm657_vm1, %v2615_v7 }
  0x54   : > { %662 = vst.msk [vmem:[#allocation3 + $0x20] sm:$0xff] %vm657_vm1, %v2615_v7  ;;  %663 = vst.msk [vmem:[#allocation3 + $0x28] sm:$0xff] %vm657_vm1, %v2615_v7 }
  0x55   : > { %664 = vst.msk [vmem:[#allocation3 + $0x30] sm:$0xff] %vm657_vm1, %v2615_v7  ;;  %665 = vst.msk [vmem:[#allocation3 + $0x38] sm:$0xff] %vm657_vm1, %v2615_v7 }
  0x56   : > { %666 = vst.msk [vmem:[#allocation3 + $0x40] sm:$0xff] %vm657_vm1, %v2615_v7  ;;  %667 = vst.msk [vmem:[#allocation3 + $0x48] sm:$0xff] %vm657_vm1, %v2615_v7 }
  0x57   : > { %668 = vst.msk [vmem:[#allocation3 + $0x50] sm:$0xff] %vm657_vm1, %v2615_v7  ;;  %669 = vst.msk [vmem:[#allocation3 + $0x58] sm:$0xff] %vm657_vm1, %v2615_v7 }
  0x58   : > { %670 = vst.msk [vmem:[#allocation3 + $0x60] sm:$0xff] %vm657_vm1, %v2615_v7  ;;  %671 = vst.msk [vmem:[#allocation3 + $0x68] sm:$0xff] %vm657_vm1, %v2615_v7 }
  0x59   : > { %672 = vst.msk [vmem:[#allocation3 + $0x70] sm:$0xff] %vm657_vm1, %v2615_v7  ;;  %673 = vst.msk [vmem:[#allocation3 + $0x78] sm:$0xff] %vm657_vm1, %v2615_v7 }
  0x5a   : > { %674 = vst.msk [vmem:[#allocation4] sm:$0xff] %vm657_vm1, %v2614_v6  ;;  %675 = vst.msk [vmem:[#allocation4 + $0x8] sm:$0xff] %vm657_vm1, %v2614_v6 }
  0x5b   : > { %676 = vst.msk [vmem:[#allocation4 + $0x10] sm:$0xff] %vm657_vm1, %v2614_v6  ;;  %677 = vst.msk [vmem:[#allocation4 + $0x18] sm:$0xff] %vm657_vm1, %v2614_v6 }
  0x5c   : > { %678 = vst.msk [vmem:[#allocation4 + $0x20] sm:$0xff] %vm657_vm1, %v2614_v6  ;;  %679 = vst.msk [vmem:[#allocation4 + $0x28] sm:$0xff] %vm657_vm1, %v2614_v6 }
  0x5d   : > { %680 = vst.msk [vmem:[#allocation4 + $0x30] sm:$0xff] %vm657_vm1, %v2614_v6  ;;  %681 = vst.msk [vmem:[#allocation4 + $0x38] sm:$0xff] %vm657_vm1, %v2614_v6 }
  0x5e   : > { %682 = vst.msk [vmem:[#allocation4 + $0x40] sm:$0xff] %vm657_vm1, %v2614_v6  ;;  %683 = vst.msk [vmem:[#allocation4 + $0x48] sm:$0xff] %vm657_vm1, %v2614_v6 }
  0x5f   : > { %684 = vst.msk [vmem:[#allocation4 + $0x50] sm:$0xff] %vm657_vm1, %v2614_v6  ;;  %685 = vst.msk [vmem:[#allocation4 + $0x58] sm:$0xff] %vm657_vm1, %v2614_v6 }
  0x60   : > { %686 = vst.msk [vmem:[#allocation4 + $0x60] sm:$0xff] %vm657_vm1, %v2614_v6  ;;  %687 = vst.msk [vmem:[#allocation4 + $0x68] sm:$0xff] %vm657_vm1, %v2614_v6 }
  0x61   : > { %688 = vst.msk [vmem:[#allocation4 + $0x70] sm:$0xff] %vm657_vm1, %v2614_v6  ;;  %689 = vst.msk [vmem:[#allocation4 + $0x78] sm:$0xff] %vm657_vm1, %v2614_v6 }
  0xca   : > { %v480_v9 = vpop.trf.xlu0 }
  0xce   : > { %v481_v10 = vpop.trf.xlu0 }
  0xcf   : > { %v496_v11 = vpack.c.bf16 %v481_v10, %v480_v9 }
  0xd1   : > { %2172 = vmatprep.mubr.msk.bf16.mxu0 %vm519_vm0, %v496_v11 }
  0xd2   : > { %v482_v12 = vpop.trf.xlu0 }
  0xd6   : > { %v483_v13 = vpop.trf.xlu0 }
  0xd7   : > { %v497_v14 = vpack.c.bf16 %v483_v13, %v482_v12 }
  0xd9   : > { %2173 = vmatmul.mubr.msk.bf16.vlgmr.msra.gmra.mrb[0].mxu0 %vm519_vm0, %v497_v14 }
  0xda   : > { %v484_v15 = vpop.trf.xlu0 }
  0xde   : > { %v485_v16 = vpop.trf.xlu0 }
  0xdf   : > { %v498_v17 = vpack.c.bf16 %v485_v16, %v484_v15 }
  0xe1   : > { %2176 = vmatprep.mubr.msk.bf16.mxu0 %vm519_vm0, %v498_v17 }
  0xe2   : > { %v486_v18 = vpop.trf.xlu0 }
  0xe6   : > { %v487_v19 = vpop.trf.xlu0 }
  0xe7   : > { %v499_v20 = vpack.c.bf16 %v487_v19, %v486_v18 }
  0xe9   : > { %2177 = vmatmul.mubr.msk.bf16.gmra.mrb[4].mxu0 %vm519_vm0, %v499_v20 }
  0xea   : > { %v488_v21 = vpop.trf.xlu0 }
  0xee   : > { %v489_v22 = vpop.trf.xlu0 }
  0xef   : > { %v500_v23 = vpack.c.bf16 %v489_v22, %v488_v21 }
  0xf1   : > { %2180 = vmatprep.mubr.msk.bf16.mxu1 %vm519_vm0, %v500_v23 }
  0xf2   : > { %v490_v24 = vpop.trf.xlu0 }
  0xf6   : > { %v491_v25 = vpop.trf.xlu0 }
  0xf7   : > { %v501_v26 = vpack.c.bf16 %v491_v25, %v490_v24 }
  0xf9   : > { %2181 = vmatmul.mubr.msk.bf16.vlgmr.msra.gmra.mrb[0].mxu1 %vm519_vm0, %v501_v26 }
  0xfa   : > { %v492_v27 = vpop.trf.xlu0 }
  0xfe   : > { %v493_v28 = vpop.trf.xlu0 }
  0xff   : > { %v502_v29 = vpack.c.bf16 %v493_v28, %v492_v27 }
 0x101   : > { %2184 = vmatprep.mubr.msk.bf16.mxu1 %vm519_vm0, %v502_v29 }
 0x102   : > { %v494_v30 = vpop.trf.xlu0 }
 0x106   : > { %v495_v31 = vpop.trf.xlu0 }
 0x107   : > { %v503_v32 = vpack.c.bf16 %v495_v31, %v494_v30 }
 0x109   : > { %2185 = vmatmul.mubr.msk.bf16.gmra.mrb[4].mxu1 %vm519_vm0, %v503_v32 }
 0x1ac   : > { %v2174_v33 = vpop.f32.mrb[0].mxu0 }
 0x1ad   : > { %v578_v35 = vpop.f32.mrb[1].mxu0  ;;  %v587_v37 = vadd.f32 %v2174_v33, %v2091_v34 }
 0x1ae   : > { %v2175_v36 = vpop.f32.mrb[2].mxu0  ;;  %v579_v40 = vadd.f32 %v2091_v34, %v578_v35 }
 0x1af   : > { %v590_v38 = vadd.f32 %v2175_v36, %v2091_v34  ;;  %v581_v39 = vpop.f32.mrb[3].mxu0 }
 0x1b0   : > { %v582_v41 = vadd.f32 %v2091_v34, %v581_v39 }
 0x1b1   : > { %v642_v42 = vpack.c.bf16 %v590_v38, %v587_v37 }
 0x1b2   : > { %v641_v43 = vpack.c.bf16 %v582_v41, %v579_v40 }
 0x1b3   : > { %650 = vst [vmem:[#allocation2 + $0x8] sm:$0xff] %v642_v42 }
 0x1b4   : > { %649 = vst [vmem:[#allocation2] sm:$0xff] %v641_v43 }
 0x1bc   : > { %v2178_v44 = vpop.f32.mrb[4].mxu0 }
 0x1bd   : > { %v594_v45 = vpop.f32.mrb[5].mxu0  ;;  %v603_v47 = vadd.f32 %v2178_v44, %v2091_v34 }
 0x1be   : > { %v2179_v46 = vpop.f32.mrb[6].mxu0  ;;  %v595_v50 = vadd.f32 %v2091_v34, %v594_v45 }
 0x1bf   : > { %v606_v48 = vadd.f32 %v2179_v46, %v2091_v34  ;;  %v597_v49 = vpop.f32.mrb[7].mxu0 }
 0x1c0   : > { %v598_v51 = vadd.f32 %v2091_v34, %v597_v49 }
 0x1c1   : > { %v644_v52 = vpack.c.bf16 %v606_v48, %v603_v47 }
 0x1c2   : > { %v643_v53 = vpack.c.bf16 %v598_v51, %v595_v50 }
 0x1c3   : > { %652 = vst [vmem:[#allocation2 + $0x18] sm:$0xff] %v644_v52 }
 0x1c4   : > { %651 = vst [vmem:[#allocation2 + $0x10] sm:$0xff] %v643_v53 }
 0x1cc   : > { %v2182_v54 = vpop.f32.mrb[0].mxu1 }
 0x1cd   : > { %v610_v55 = vpop.f32.mrb[1].mxu1  ;;  %v619_v57 = vadd.f32 %v2182_v54, %v2091_v34 }
 0x1ce   : > { %v2183_v56 = vpop.f32.mrb[2].mxu1  ;;  %v611_v60 = vadd.f32 %v2091_v34, %v610_v55 }
 0x1cf   : > { %v622_v58 = vadd.f32 %v2183_v56, %v2091_v34  ;;  %v613_v59 = vpop.f32.mrb[3].mxu1 }
 0x1d0   : > { %v614_v61 = vadd.f32 %v2091_v34, %v613_v59 }
 0x1d1   : > { %v646_v62 = vpack.c.bf16 %v622_v58, %v619_v57 }
 0x1d2   : > { %v645_v63 = vpack.c.bf16 %v614_v61, %v611_v60 }
 0x1d3   : > { %654 = vst [vmem:[#allocation2 + $0x28] sm:$0xff] %v646_v62 }
 0x1d4   : > { %653 = vst [vmem:[#allocation2 + $0x20] sm:$0xff] %v645_v63 }
 0x1dc   : > { %v2186_v0 = vpop.f32.mrb[4].mxu1 }
 0x1dd   : > { %v626_v1 = vpop.f32.mrb[5].mxu1  ;;  %v635_v3 = vadd.f32 %v2186_v0, %v2091_v34 }
 0x1de   : > { %v2187_v2 = vpop.f32.mrb[6].mxu1  ;;  %v627_v6 = vadd.f32 %v2091_v34, %v626_v1 }
 0x1df   : > { %v638_v4 = vadd.f32 %v2187_v2, %v2091_v34  ;;  %v629_v5 = vpop.f32.mrb[7].mxu1 }
 0x1e0   : > { %v630_v7 = vadd.f32 %v2091_v34, %v629_v5 }
 0x1e1   : > { %v648_v8 = vpack.c.bf16 %v638_v4, %v635_v3 }
 0x1e2   : > { %v647_v9 = vpack.c.bf16 %v630_v7, %v627_v6 }
 0x1e3   : > { %656 = vst [vmem:[#allocation2 + $0x38] sm:$0xff] %v648_v8 }
 0x1e4   : > { %655 = vst [vmem:[#allocation2 + $0x30] sm:$0xff] %v647_v9 }
 0x1e5 PF: > { %v706_v10 = vld [vmem:[%s420_s28] sm:$0xff]  ;;  %v707_v11 = vld [vmem:[%s420_s28 + $0x8] sm:$0xff]  ;;  %vm861_vm2 = vcmask 130048   ;;  %v2616_v14 = vmov 0   ;;  %vm2618_vm3 = vmmov 0   ;;  %vm1479_vm4 = vcmask 7168  }
 0x1e6   : > { %v2892_v12 = vpack.c.bf16 %v707_v11, %v706_v10  ;;  %v2379_v13 = vld [vmem:[%s3401_s4] sm:$0xff]   ;;  %2377 = vset.pattern.permute.xlu0 %v2616_v14  ;;  %2378 = vset.pattern.permute.xlu1 %v2616_v14  ;;  %v2380_v15 = vld [vmem:[%s3401_s4 + $0x8] sm:$0xff]   ;;  %v2381_v16 = vld [vmem:[%s3401_s4 + $0x10] sm:$0xff]   ;;  %s3431_s26 = sld [smem:[#allocation21_spill]]  ;;  %p2119_p6 = scmp.ne.s32.totalorder %s2588_s16, 1 }
 0x1e7   : > { %2190 = vmatprep.mubr.msk.bf16.mxu0 %vm861_vm2, %v2379_v13  ;;  %v725_v17 = vld [vmem:[%s3402_s5] sm:$0xff]  ;;  %v727_v18 = vld [vmem:[%s3402_s5 + $0x10] sm:$0xff]  ;;  %v726_v19 = vld [vmem:[%s3402_s5 + $0x8] sm:$0xff]  ;;  %s1910_s16 = sld [smem:[#allocation6]] (!%p2119_p6) }
 0x1e8   : > { %2188 = vmatprep.subr.bf16.mxu0 %v2892_v12  ;;  %743 = vperm.xlu0 %2377, %v725_v17   ;;  %v2382_v20 = vld [vmem:[%s3401_s4 + $0x18] sm:$0xff]   ;;  %v2383_v22 = vld [vmem:[%s3401_s4 + $0x20] sm:$0xff]   ;;  %v730_v24 = vld [vmem:[%s3402_s5 + $0x28] sm:$0xff] }
 0x1e9   : > { %2189 = vmatpush3.bf16.msra.mxu0 %v2892_v12  ;;  %753 = vperm.xlu1 %2378, %v727_v18   ;;  %v728_v21 = vld [vmem:[%s3402_s5 + $0x18] sm:$0xff]  ;;  %v729_v23 = vld [vmem:[%s3402_s5 + $0x20] sm:$0xff]  ;;  %v731_v25 = vld [vmem:[%s3402_s5 + $0x30] sm:$0xff] }
 0x1ea   : > { %v2384_v26 = vld [vmem:[%s3401_s4 + $0x28] sm:$0xff]   ;;  %v732_v27 = vld [vmem:[%s3402_s5 + $0x38] sm:$0xff]  ;;  %v2385_v28 = vld [vmem:[%s3401_s4 + $0x30] sm:$0xff]  }
 0x1eb   : > { %v733_v29 = vld [vmem:[%s3402_s5 + $0x40] sm:$0xff]  ;;  %v734_v30 = vld [vmem:[%s3402_s5 + $0x48] sm:$0xff]  ;;  %v735_v31 = vld [vmem:[%s3402_s5 + $0x50] sm:$0xff] }
 0x1ec   : > { %2191 = vmatmul.mubr.msk.bf16.vlgmr.msra.gmra.mrb[0].mxu0 %vm861_vm2, %v2380_v15  ;;  %748 = vperm.xlu0 %2377, %v726_v19   ;;  %v2386_v32 = vld [vmem:[%s3401_s4 + $0x38] sm:$0xff]   ;;  %v737_v34 = vld [vmem:[%s3402_s5 + $0x60] sm:$0xff]  ;;  %v738_v35 = vld [vmem:[%s3402_s5 + $0x68] sm:$0xff] }
 0x1ed   : > { %2194 = vmatprep.mubr.msk.bf16.mxu0 %vm861_vm2, %v2381_v16  ;;  %758 = vperm.xlu1 %2378, %v728_v21   ;;  %v736_v33 = vld [vmem:[%s3402_s5 + $0x58] sm:$0xff]  ;;  %v739_v36 = vld [vmem:[%s3402_s5 + $0x70] sm:$0xff]  ;;  %v1046_v38 = vld [vmem:[#allocation2] sm:$0xff] }
 0x1ee   : > { %v740_v37 = vld [vmem:[%s3402_s5 + $0x78] sm:$0xff] }
 0x1f0   : > { %763 = vperm.xlu0 %2377, %v729_v23  }
 0x1f1   : > { %768 = vperm.xlu1 %2378, %v730_v24  }
 0x1f4   : > { %2195 = vmatmul.mubr.msk.bf16.gmra.mrb[4].mxu0 %vm861_vm2, %v2382_v20  ;;  %773 = vperm.xlu0 %2377, %v731_v25  }
 0x1f5   : > { %2198 = vmatprep.mubr.msk.bf16.mxu0 %vm861_vm2, %v2383_v22  ;;  %778 = vperm.xlu1 %2378, %v732_v27  }
 0x1f8   : > { %783 = vperm.xlu0 %2377, %v733_v29  }
 0x1f9   : > { %788 = vperm.xlu1 %2378, %v734_v30  }
 0x1fc   : > { %2199 = vmatmul.mubr.msk.bf16.gmra.mrb[8].mxu0 %vm861_vm2, %v2384_v26  ;;  %793 = vperm.xlu0 %2377, %v735_v31  }
 0x1fd   : > { %2202 = vmatprep.mubr.msk.bf16.mxu0 %vm861_vm2, %v2385_v28  ;;  %798 = vperm.xlu1 %2378, %v736_v33   ;;  %v1048_v33 = vld [vmem:[#allocation2 + $0x10] sm:$0xff] }
 0x200   : > { %803 = vperm.xlu0 %2377, %v737_v34   ;;  %v1049_v34 = vld [vmem:[#allocation2 + $0x18] sm:$0xff] }
 0x201   : > { %808 = vperm.xlu1 %2378, %v738_v35   ;;  %v1050_v35 = vld [vmem:[#allocation2 + $0x20] sm:$0xff] }
 0x204   : > { %2203 = vmatmul.mubr.msk.bf16.gmra.mrb[12].mxu0 %vm861_vm2, %v2386_v32  ;;  %813 = vperm.xlu0 %2377, %v739_v36   ;;  %v1047_v32 = vld [vmem:[#allocation2 + $0x8] sm:$0xff] }
 0x205   : > { %818 = vperm.xlu1 %2378, %v740_v37   ;;  %2228 = vmatprep.mubr.bf16.mxu0 %v1046_v38  ;;  %v1051_v36 = vld [vmem:[#allocation2 + $0x28] sm:$0xff]  ;;  %v1052_v37 = vld [vmem:[#allocation2 + $0x30] sm:$0xff]  ;;  %v1053_v38 = vld [vmem:[#allocation2 + $0x38] sm:$0xff] }
 0x267   : > { %v744_v39 = vpop.permute.xlu0 %743 }
 0x268   : > { %v754_v40 = vpop.permute.xlu1 %753 }
 0x26b   : > { %v749_v41 = vpop.permute.xlu0 %748 }
 0x26c   : > { %v759_v42 = vpop.permute.xlu1 %758 }
 0x26f   : > { %v764_v43 = vpop.permute.xlu0 %763 }
 0x270   : > { %v769_v44 = vpop.permute.xlu1 %768 }
 0x273   : > { %v774_v46 = vpop.permute.xlu0 %773 }
 0x274   : > { %v779_v48 = vpop.permute.xlu1 %778 }
 0x277   : > { %v784_v57 = vpop.permute.xlu0 %783 }
 0x278   : > { %v789_v58 = vpop.permute.xlu1 %788 }
 0x27b   : > { %v794_v3 = vpop.permute.xlu0 %793 }
 0x27c   : > { %v799_v5 = vpop.permute.xlu1 %798 }
 0x27f   : > { %v804_v10 = vpop.permute.xlu0 %803 }
 0x280   : > { %v809_v15 = vpop.permute.xlu1 %808 }
 0x283   : > { %v814_v21 = vpop.permute.xlu0 %813 }
 0x284   : > { %v819_v23 = vpop.permute.xlu1 %818 }
 0x2bf   : > { %v2192_v45 = vpop.f32.mrb[0].mxu0 }
 0x2c0   : > { %v920_v47 = vpop.f32.mrb[1].mxu0  ;;  %v929_v50 = vadd.f32 %v2192_v45, %v754_v40  ;;  %v2387_v40 = vld [vmem:[%s3403_s6] sm:$0xff]  }
 0x2c1   : > { %v2193_v49 = vpop.f32.mrb[2].mxu0  ;;  %v921_v53 = vadd.f32 %v920_v47, %v744_v39  ;;  %v2617_v39 = vmov 0.0  }
 0x2c2   : > { %v932_v51 = vadd.f32 %v2193_v49, %v759_v42  ;;  %v923_v52 = vpop.f32.mrb[3].mxu0  ;;  %2206 = vmatprep.subr.bf16.mxu1 %v2617_v39  ;;  %2208 = vmatprep.mubr.msk.bf16.mxu1 %vm2618_vm3, %v2617_v39 }
 0x2c3   : > { %v924_v54 = vadd.f32 %v923_v52, %v749_v41  ;;  %2207 = vmatpush3.bf16.msra.mxu1 %v2892_v12 }
 0x2c4   : > { %v1055_v55 = vpack.c.bf16 %v932_v51, %v929_v50 }
 0x2c5   : > { %v1054_v56 = vpack.c.bf16 %v924_v54, %v921_v53 }
 0x2c6   : > { %2209 = vmatmul.mubr.msk.bf16.vlgmr.msra.gmra.mrb[0].mxu1 %vm861_vm2, %v2387_v40 }
 0x2c7   : > { %v2196_v59 = vpop.f32.mrb[4].mxu0  ;;  %2212 = vmatprep.subr.bf16.mxu0 %v1054_v56 }
 0x2c8   : > { %v936_v60 = vpop.f32.mrb[5].mxu0  ;;  %2213 = vmatpush3.bf16.msra.mxu0 %v1054_v56  ;;  %v945_v62 = vadd.f32 %v2196_v59, %v774_v46  ;;  %v3029_v56 = vld [vmem:[#allocation3] sm:$0xff] }
 0x2c9   : > { %v2197_v61 = vpop.f32.mrb[6].mxu0  ;;  %2214 = vmatprep.subr.bf16.mxu0 %v1055_v55  ;;  %v937_v1 = vadd.f32 %v936_v60, %v764_v43 }
 0x2ca   : > { %v948_v63 = vadd.f32 %v2197_v61, %v779_v48  ;;  %v939_v0 = vpop.f32.mrb[7].mxu0  ;;  %v3034_v61 = vld [vmem:[#allocation3 + $0x10] sm:$0xff] }
 0x2cb   : > { %v940_v2 = vadd.f32 %v939_v0, %v769_v44 }
 0x2cc   : > { %v1057_v4 = vpack.c.bf16 %v948_v63, %v945_v62  ;;  %2215 = vmatpush3.bf16.msra.mxu0 %v1055_v55 }
 0x2cd   : > { %v1056_v6 = vpack.c.bf16 %v940_v2, %v937_v1  ;;  %v3042_v1 = vld [vmem:[#allocation3 + $0x18] sm:$0xff]  ;;  %v985_v2 = vld [vmem:[%s3431_s26] sm:$0xff] }
 0x2cf   : > { %v2200_v7 = vpop.f32.mrb[8].mxu0  ;;  %2216 = vmatprep.subr.bf16.mxu0 %v1056_v6 }
 0x2d0   : > { %v952_v8 = vpop.f32.mrb[9].mxu0  ;;  %2217 = vmatpush3.bf16.msra.mxu0 %v1056_v6  ;;  %v961_v11 = vadd.f32 %v2200_v7, %v794_v3  ;;  %v1163_v3 = vld [vmem:[#allocation3 + $0x20] sm:$0xff] }
 0x2d1   : > { %v2201_v9 = vpop.f32.mrb[10].mxu0  ;;  %2218 = vmatprep.subr.bf16.mxu0 %v1057_v4  ;;  %v953_v16 = vadd.f32 %v952_v8, %v784_v57 }
 0x2d2   : > { %v964_v13 = vadd.f32 %v2201_v9, %v799_v5  ;;  %v955_v14 = vpop.f32.mrb[11].mxu0  ;;  %v1165_v9 = vld [vmem:[#allocation3 + $0x30] sm:$0xff] }
 0x2d3   : > { %v956_v17 = vadd.f32 %v955_v14, %v789_v58  ;;  %v1160_v58 = vld [vmem:[#allocation3 + $0x8] sm:$0xff] }
 0x2d4   : > { %v1059_v18 = vpack.c.bf16 %v964_v13, %v961_v11  ;;  %2219 = vmatpush3.bf16.msra.mxu0 %v1057_v4 }
 0x2d5   : > { %v1058_v19 = vpack.c.bf16 %v956_v17, %v953_v16  ;;  %v3064_v17 = vld [vmem:[#allocation3 + $0x38] sm:$0xff] }
 0x2d7   : > { %v2204_v20 = vpop.f32.mrb[12].mxu0  ;;  %2220 = vmatprep.subr.bf16.mxu0 %v1058_v19 }
 0x2d8   : > { %v968_v22 = vpop.f32.mrb[13].mxu0  ;;  %2221 = vmatpush3.bf16.msra.mxu0 %v1058_v19  ;;  %v977_v25 = vadd.f32 %v2204_v20, %v814_v21  ;;  %v986_v21 = vld [vmem:[%s3431_s26 + $0x8] sm:$0xff] }
 0x2d9   : > { %v2205_v24 = vpop.f32.mrb[14].mxu0  ;;  %2222 = vmatprep.subr.bf16.mxu0 %v1059_v18  ;;  %v969_v28 = vadd.f32 %v968_v22, %v804_v10  ;;  %v3055_v10 = vld [vmem:[#allocation3 + $0x28] sm:$0xff] }
 0x2da   : > { %v980_v26 = vadd.f32 %v2205_v24, %v819_v23  ;;  %v971_v27 = vpop.f32.mrb[15].mxu0 }
 0x2db   : > { %v972_v29 = vadd.f32 %v971_v27, %v809_v15 }
 0x2dc   : > { %v1061_v30 = vpack.c.bf16 %v980_v26, %v977_v25  ;;  %2223 = vmatpush3.bf16.msra.mxu0 %v1059_v18  ;;  %v3066_v18 = vld [vmem:[#allocation3 + $0x40] sm:$0xff]  ;;  %v1169_v25 = vld [vmem:[#allocation3 + $0x50] sm:$0xff]  ;;  %v3081_v26 = vld [vmem:[#allocation3 + $0x48] sm:$0xff] }
 0x2dd   : > { %v1060_v31 = vpack.c.bf16 %v972_v29, %v969_v28 }
 0x2df   : > { %2224 = vmatprep.subr.bf16.mxu0 %v1060_v31 }
 0x2e0   : > { %2225 = vmatpush3.bf16.msra.mxu0 %v1060_v31 }
 0x2e1   : > { %2226 = vmatprep.subr.bf16.mxu0 %v1061_v30 }
 0x2e4   : > { %2227 = vmatpush3.bf16.msra.mxu0 %v1061_v30 }
 0x2e7   : > { %2229 = vmatmul.mubr.bf16.vlgmr.msra.gmra.mrb[16].mxu0 %v1047_v32 }
 0x2e8   : > { %2232 = vmatprep.mubr.bf16.mxu0 %v1048_v33 }
 0x2ef   : > { %2233 = vmatmul.mubr.bf16.gmra.mrb[20].mxu0 %v1049_v34 }
 0x2f0   : > { %2236 = vmatprep.mubr.bf16.mxu0 %v1050_v35  ;;  %v3093_v35 = vld [vmem:[#allocation3 + $0x58] sm:$0xff] }
 0x2f7   : > { %2237 = vmatmul.mubr.bf16.gmra.mrb[24].mxu0 %v1051_v36  ;;  %v1171_v36 = vld [vmem:[#allocation3 + $0x60] sm:$0xff] }
 0x2f8   : > { %2240 = vmatprep.mubr.bf16.mxu0 %v1052_v37 }
 0x2ff   : > { %2241 = vmatmul.mubr.bf16.gmra.mrb[28].mxu0 %v1053_v38 }
 0x399   : > { %v3053_v8 = vpop.f32.mrb[0].mxu1 }
 0x39a   : > { %v2210_v11 = vpop.f32.mrb[1].mxu1 }
 0x39b   : > { %v3083_v27 = vpop.f32.mrb[2].mxu1  ;;  %v3118_v11 = vld [vmem:[#allocation3 + $0x78] sm:$0xff] }
 0x39c   : > { %v2211_v28 = vpop.f32.mrb[3].mxu1 }
 0x3ba   : > { %v2981_v41 = vpop.f32.mrb[16].mxu0 }
 0x3bb   : > { %v2983_v42 = vpop.f32.mrb[17].mxu0 }
 0x3bc   : > { %1175 = vmax.xlane.f32.xlu0 %v2983_v42  ;;  %v2986_v43 = vpop.f32.mrb[18].mxu0 }
 0x3bd   : > { %v2988_v44 = vpop.f32.mrb[19].mxu0 }
 0x3be   : > { %1177 = vmax.xlane.f32.xlu1 %v2988_v44 }
 0x3c0   : > { %1179 = vmax.xlane.f32.xlu0 %v2981_v41 }
 0x3c2   : > { %v2992_v45 = vpop.f32.mrb[20].mxu0 }
 0x3c3   : > { %v2994_v46 = vpop.f32.mrb[21].mxu0 }
 0x3c4   : > { %1181 = vmax.xlane.f32.xlu0 %v2986_v43  ;;  %1183 = vmax.xlane.f32.xlu1 %v2994_v46  ;;  %v2998_v12 = vpop.f32.mrb[22].mxu0 }
 0x3c5   : > { %v3000_v47 = vpop.f32.mrb[23].mxu0 }
 0x3c8   : > { %1187 = vmax.xlane.f32.xlu1 %v2992_v45  ;;  %1185 = vmax.xlane.f32.xlu0 %v3000_v47 }
 0x3ca   : > { %v3004_v48 = vpop.f32.mrb[24].mxu0 }
 0x3cb   : > { %v3006_v49 = vpop.f32.mrb[25].mxu0 }
 0x3cc   : > { %1189 = vmax.xlane.f32.xlu0 %v2998_v12  ;;  %1191 = vmax.xlane.f32.xlu1 %v3006_v49  ;;  %v3010_v50 = vpop.f32.mrb[26].mxu0 }
 0x3cd   : > { %v3012_v51 = vpop.f32.mrb[27].mxu0 }
 0x3d0   : > { %1195 = vmax.xlane.f32.xlu1 %v3004_v48  ;;  %1193 = vmax.xlane.f32.xlu0 %v3012_v51 }
 0x3d2   : > { %v3016_v52 = vpop.f32.mrb[28].mxu0 }
 0x3d3   : > { %v3018_v53 = vpop.f32.mrb[29].mxu0 }
 0x3d4   : > { %1197 = vmax.xlane.f32.xlu0 %v3010_v50  ;;  %1199 = vmax.xlane.f32.xlu1 %v3018_v53  ;;  %v3022_v54 = vpop.f32.mrb[30].mxu0 }
 0x3d5   : > { %v3024_v55 = vpop.f32.mrb[31].mxu0 }
 0x3d8   : > { %1203 = vmax.xlane.f32.xlu1 %v3016_v52  ;;  %1201 = vmax.xlane.f32.xlu0 %v3024_v55 }
 0x3dc   : > { %1205 = vmax.xlane.f32.xlu0 %v3022_v54 }
 0x449   : > { %v1176_v57 = vpop.xlane.xlu0 %1175 }
 0x44a   : > { %v3032_v59 = vmax.f32 %v3029_v56, %v1176_v57 }
 0x44b   : > { %v1178_v60 = vpop.xlane.xlu1 %1177 }
 0x44c   : > { %1746 = vst.msk [vmem:[#allocation3] sm:$0xff] %vm1479_vm4, %v3032_v59  ;;  %v1208_v62 = vmax.f32 %v1160_v58, %v1178_v60  ;;  %v3102_v60 = vld [vmem:[#allocation3 + $0x70] sm:$0xff] }
 0x44d   : > { %v1180_v63 = vpop.xlane.xlu0 %1179 }
 0x44e   : > { %1747 = vst.msk [vmem:[#allocation3 + $0x8] sm:$0xff] %vm1479_vm4, %v1208_v62  ;;  %v3040_v0 = vmax.f32 %v3034_v61, %v1180_v63  ;;  %1278 = vperm.xlu0 %2377, %v1208_v62   ;;  %v1224_v24 = vsub.f32 %v1160_v58, %v1208_v62  ;;  %v3104_v62 = vld [vmem:[#allocation3 + $0x68] sm:$0xff]  ;;  %v1223_v63 = vsub.f32 %v3029_v56, %v3032_v59 }
 0x450   : > { %1748 = vst.msk [vmem:[#allocation3 + $0x10] sm:$0xff] %vm1479_vm4, %v3040_v0  ;;  %1283 = vperm.xlu1 %2378, %v3040_v0   ;;  %v1241_v33 = vmul.f32 1.442695, %v1224_v24  ;;  %v1239_v56 = vmul.f32 1.442695, %v1223_v63 }
 0x451   : > { %v1182_v4 = vpop.xlane.xlu0 %1181  ;;  %v1184_v5 = vpop.xlane.xlu1 %1183 }
 0x452   : > { %v3051_v6 = vmax.f32 %v3042_v1, %v1182_v4  ;;  %989 = vperm.xlu0 %2377, %v985_v2   ;;  %v1211_v7 = vmax.f32 %v1163_v3, %v1184_v5  ;;  %2388 = vpow2.f32 %v1241_v33 }
 0x454   : > { %1749 = vst.msk [vmem:[#allocation3 + $0x18] sm:$0xff] %vm1479_vm4, %v3051_v6  ;;  %1750 = vst.msk [vmem:[#allocation3 + $0x20] sm:$0xff] %vm1479_vm4, %v1211_v7  ;;  %1273 = vperm.xlu1 %2378, %v3032_v59   ;;  %v1227_v34 = vsub.f32 %v1163_v3, %v1211_v7  ;;  %v1225_v59 = vsub.f32 %v3034_v61, %v3040_v0  ;;  %v1226_v24 = vsub.f32 %v3042_v1, %v3051_v6 }
 0x455   : > { %v1188_v13 = vpop.xlane.xlu1 %1187  ;;  %v1186_v14 = vpop.xlane.xlu0 %1185 }
 0x456   : > { %1293 = vperm.xlu0 %2377, %v1211_v7   ;;  %v1213_v15 = vmax.f32 %v1165_v9, %v1188_v13  ;;  %v3062_v16 = vmax.f32 %v3055_v10, %v1186_v14  ;;  %v1247_v57 = vmul.f32 1.442695, %v1227_v34  ;;  %v1243_v0 = vmul.f32 1.442695, %v1225_v59 }
 0x457   : > { %v1245_v28 = vmul.f32 1.442695, %v1226_v24 }
 0x458   : > { %1752 = vst.msk [vmem:[#allocation3 + $0x30] sm:$0xff] %vm1479_vm4, %v1213_v15  ;;  %1751 = vst.msk [vmem:[#allocation3 + $0x28] sm:$0xff] %vm1479_vm4, %v3062_v16  ;;  %1288 = vperm.xlu1 %2378, %v3051_v6   ;;  %v1229_v58 = vsub.f32 %v1165_v9, %v1213_v15  ;;  %2390 = vpow2.f32 %v1247_v57 }
 0x459   : > { %v1190_v19 = vpop.xlane.xlu0 %1189  ;;  %v1192_v20 = vpop.xlane.xlu1 %1191 }
 0x45a   : > { %1303 = vperm.xlu0 %2377, %v1213_v15   ;;  %v3076_v22 = vmax.f32 %v3064_v17, %v1190_v19  ;;  %v3079_v23 = vmax.f32 %v3066_v18, %v1192_v20  ;;  %v1251_v7 = vmul.f32 1.442695, %v1229_v58 }
 0x45c   : > { %1753 = vst.msk [vmem:[#allocation3 + $0x38] sm:$0xff] %vm1479_vm4, %v3076_v22  ;;  %1754 = vst.msk [vmem:[#allocation3 + $0x40] sm:$0xff] %vm1479_vm4, %v3079_v23  ;;  %994 = vperm.xlu1 %2378, %v986_v21   ;;  %2392 = vpow2.f32 %v1251_v7  ;;  %v1231_v19 = vsub.f32 %v3066_v18, %v3079_v23  ;;  %v3140_v61 = vpop.eup %2388 }
 0x45d   : > { %v1196_v29 = vpop.xlane.xlu1 %1195  ;;  %v1194_v30 = vpop.xlane.xlu0 %1193  ;;  %2394 = vpow2.f32 %v1239_v56 }
 0x45e   : > { %1313 = vperm.xlu0 %2377, %v3079_v23   ;;  %v1217_v31 = vmax.f32 %v1169_v25, %v1196_v29  ;;  %v3091_v32 = vmax.f32 %v3081_v26, %v1194_v30  ;;  %v1228_v29 = vsub.f32 %v3055_v10, %v3062_v16 }
 0x460   : > { %1756 = vst.msk [vmem:[#allocation3 + $0x50] sm:$0xff] %vm1479_vm4, %v1217_v31  ;;  %1755 = vst.msk [vmem:[#allocation3 + $0x48] sm:$0xff] %vm1479_vm4, %v3091_v32  ;;  %1298 = vperm.xlu1 %2378, %v3062_v16   ;;  %v1233_v9 = vsub.f32 %v1169_v25, %v1217_v31  ;;  %v1255_v25 = vmul.f32 1.442695, %v1231_v19  ;;  %v1249_v6 = vmul.f32 1.442695, %v1228_v29 }
 0x461   : > { %v1198_v37 = vpop.xlane.xlu0 %1197  ;;  %v1200_v38 = vpop.xlane.xlu1 %1199 }
 0x462   : > { %1323 = vperm.xlu0 %2377, %v1217_v31   ;;  %v3100_v39 = vmax.f32 %v3093_v35, %v1198_v37  ;;  %v1219_v40 = vmax.f32 %v1171_v36, %v1200_v38  ;;  %v1259_v20 = vmul.f32 1.442695, %v1233_v9  ;;  %v3146_v23 = vpop.eup %2390  ;;  %v1230_v31 = vsub.f32 %v3064_v17, %v3076_v22 }
 0x464   : > { %1757 = vst.msk [vmem:[#allocation3 + $0x58] sm:$0xff] %vm1479_vm4, %v3100_v39  ;;  %1758 = vst.msk [vmem:[#allocation3 + $0x60] sm:$0xff] %vm1479_vm4, %v1219_v40  ;;  %1308 = vperm.xlu1 %2378, %v3076_v22   ;;  %2396 = vpow2.f32 %v1259_v20  ;;  %v1235_v18 = vsub.f32 %v1171_v36, %v1219_v40  ;;  %v1253_v16 = vmul.f32 1.442695, %v1230_v31  ;;  %v1234_v34 = vsub.f32 %v3093_v35, %v3100_v39 }
 0x465   : > { %v1204_v2 = vpop.xlane.xlu1 %1203  ;;  %v1202_v3 = vpop.xlane.xlu0 %1201  ;;  %2398 = vpow2.f32 %v1243_v0  ;;  %v1232_v22 = vsub.f32 %v3081_v26, %v3091_v32 }
 0x466   : > { %1333 = vperm.xlu0 %2377, %v1219_v40   ;;  %v3113_v4 = vmax.f32 %v3102_v60, %v1204_v2  ;;  %v3116_v5 = vmax.f32 %v3104_v62, %v1202_v3  ;;  %2400 = vpow2.f32 %v1255_v25  ;;  %v1263_v30 = vmul.f32 1.442695, %v1235_v18  ;;  %v3152_v1 = vpop.eup %2392 }
 0x467   : > { %2402 = vpow2.f32 %v1245_v28  ;;  %v3157_v33 = vpop.eup %2394  ;;  %v1261_v37 = vmul.f32 1.442695, %v1234_v34 }
 0x468   : > { %v1237_v13 = vsub.f32 %v3102_v60, %v3113_v4  ;;  %1760 = vst.msk [vmem:[#allocation3 + $0x70] sm:$0xff] %vm1479_vm4, %v3113_v4  ;;  %1759 = vst.msk [vmem:[#allocation3 + $0x68] sm:$0xff] %vm1479_vm4, %v3116_v5  ;;  %1318 = vperm.xlu1 %2378, %v3091_v32   ;;  %2404 = vpow2.f32 %v1263_v30  ;;  %v1236_v40 = vsub.f32 %v3104_v62, %v3116_v5 }
 0x469   : > { %v1206_v14 = vpop.xlane.xlu0 %1205  ;;  %2406 = vpow2.f32 %v1249_v6 }
 0x46a   : > { %1343 = vperm.xlu0 %2377, %v3113_v4   ;;  %v3131_v15 = vmax.f32 %v3118_v11, %v1206_v14  ;;  %2408 = vpow2.f32 %v1253_v16  ;;  %v1265_v26 = vmul.f32 1.442695, %v1236_v40 }
 0x46b   : > { %2410 = vpow2.f32 %v1261_v37 }
 0x46c   : > { %v1238_v21 = vsub.f32 %v3118_v11, %v3131_v15  ;;  %1761 = vst.msk [vmem:[#allocation3 + $0x78] sm:$0xff] %vm1479_vm4, %v3131_v15  ;;  %1328 = vperm.xlu1 %2378, %v3100_v39   ;;  %v1257_v39 = vmul.f32 1.442695, %v1232_v22 }
 0x46e   : > { %1519 = vperm.xlu0 %2377, %v3140_v61   ;;  %v3160_v10 = vpop.eup %2396  ;;  %2412 = vpow2.f32 %v1257_v39 }
 0x46f   : > { %v3165_v36 = vpop.eup %2398  ;;  %2414 = vpow2.f32 %v1265_v26 }
 0x470   : > { %1338 = vperm.xlu1 %2378, %v3116_v5   ;;  %v3168_v17 = vpop.eup %2400 }
 0x471   : > { %v3173_v38 = vpop.eup %2402 }
 0x472   : > { %1534 = vperm.xlu0 %2377, %v3146_v23   ;;  %v3176_v35 = vpop.eup %2404 }
 0x473   : > { %v3181_v57 = vpop.eup %2406 }
 0x474   : > { %1348 = vperm.xlu1 %2378, %v3131_v15   ;;  %v3184_v32 = vpop.eup %2408 }
 0x475   : > { %v3187_v58 = vpop.eup %2410 }
 0x476   : > { %1544 = vperm.xlu0 %2377, %v3152_v1  }
 0x478   : > { %1514 = vperm.xlu1 %2378, %v3157_v33   ;;  %v3190_v63 = vpop.eup %2412 }
 0x479   : > { %v3193_v62 = vpop.eup %2414 }
 0x47a   : > { %1564 = vperm.xlu0 %2377, %v3160_v10  }
 0x47c   : > { %1524 = vperm.xlu1 %2378, %v3165_v36  }
 0x47e   : > { %1554 = vperm.xlu0 %2377, %v3168_v17  }
 0x480   : > { %1529 = vperm.xlu1 %2378, %v3173_v38  }
 0x482   : > { %1574 = vperm.xlu0 %2377, %v3176_v35  }
 0x484   : > { %1539 = vperm.xlu1 %2378, %v3181_v57  }
 0x488   : > { %1549 = vperm.xlu1 %2378, %v3184_v32  }
 0x48c   : > { %1569 = vperm.xlu1 %2378, %v3187_v58  }
 0x490   : > { %1559 = vperm.xlu1 %2378, %v3190_v63  }
 0x494   : > { %1579 = vperm.xlu1 %2378, %v3193_v62  }
 0x4cd   : > { %v1279_v2 = vpop.permute.xlu0 %1278 }
 0x4ce   : > { %v1352_v3 = vsub.f32 %v2988_v44, %v1279_v2 }
 0x4cf   : > { %v1284_v5 = vpop.permute.xlu1 %1283 }
 0x4d0   : > { %v1369_v7 = vmul.f32 1.442695, %v1352_v3  ;;  %v1353_v9 = vsub.f32 %v2981_v41, %v1284_v5 }
 0x4d1   : > { %v990_v56 = vpop.permute.xlu0 %989 }
 0x4d2   : > { %2416 = vpow2.f32 %v1369_v7  ;;  %v1371_v59 = vmul.f32 1.442695, %v1353_v9  ;;  %v1040_v6 = vadd.f32 %v3053_v8, %v990_v56 }
 0x4d3   : > { %v1274_v14 = vpop.permute.xlu1 %1273 }
 0x4d4   : > { %2418 = vpow2.f32 %v1371_v59  ;;  %v1351_v19 = vsub.f32 %v2983_v42, %v1274_v14 }
 0x4d5   : > { %v1294_v20 = vpop.permute.xlu0 %1293 }
 0x4d6   : > { %v1367_v0 = vmul.f32 1.442695, %v1351_v19  ;;  %v1355_v44 = vsub.f32 %v2994_v46, %v1294_v20 }
 0x4d7   : > { %v1289_v24 = vpop.permute.xlu1 %1288 }
 0x4d8   : > { %2420 = vpow2.f32 %v1367_v0  ;;  %v1354_v25 = vsub.f32 %v2986_v43, %v1289_v24  ;;  %v1375_v22 = vmul.f32 1.442695, %v1355_v44 }
 0x4d9   : > { %v1304_v18 = vpop.permute.xlu0 %1303 }
 0x4da   : > { %v1373_v28 = vmul.f32 1.442695, %v1354_v25  ;;  %v1357_v29 = vsub.f32 %v2992_v45, %v1304_v18 }
 0x4db   : > { %v995_v41 = vpop.permute.xlu1 %994 }
 0x4dc   : > { %v2417_v30 = vpop.eup %2416  ;;  %2422 = vpow2.f32 %v1373_v28  ;;  %v1379_v31 = vmul.f32 1.442695, %v1357_v29  ;;  %v1043_v42 = vadd.f32 %v3083_v27, %v995_v41 }
 0x4dd   : > { %1433 = vadd.xlane.f32.xlu1 %v2417_v30  ;;  %v1314_v16 = vpop.permute.xlu0 %1313 }
 0x4de   : > { %v2419_v34 = vpop.eup %2418  ;;  %2424 = vpow2.f32 %v1379_v31  ;;  %v1616_v43 = vpack.c.bf16 %v1043_v42, %v1040_v6  ;;  %v1359_v8 = vsub.f32 %v3006_v49, %v1314_v16 }
 0x4df   : > { %v1299_v37 = vpop.permute.xlu1 %1298  ;;  %1435 = vadd.xlane.f32.xlu0 %v2419_v34  ;;  %2426 = vpow2.f32 %v1375_v22 }
 0x4e0   : > { %v1356_v46 = vsub.f32 %v3000_v47, %v1299_v37  ;;  %2244 = vmatprep.subr.bf16.mxu1 %v1616_v43  ;;  %v1383_v9 = vmul.f32 1.442695, %v1359_v8 }
 0x4e1   : > { %2245 = vmatpush3.bf16.xpose.msra.mxu1 %v1616_v43  ;;  %v1324_v45 = vpop.permute.xlu0 %1323 }
 0x4e2   : > { %v2421_v39 = vpop.eup %2420  ;;  %v1377_v40 = vmul.f32 1.442695, %v1356_v46  ;;  %v1361_v27 = vsub.f32 %v3004_v48, %v1324_v45 }
 0x4e3   : > { %v1309_v26 = vpop.permute.xlu1 %1308  ;;  %1431 = vadd.xlane.f32.xlu0 %v2421_v39  ;;  %v1608_v2 = vpack.c.bf16 %v2417_v30, %v2421_v39 }
 0x4e4   : > { %2428 = vpow2.f32 %v1377_v40  ;;  %v1387_v3 = vmul.f32 1.442695, %v1361_v27  ;;  %v1358_v5 = vsub.f32 %v2998_v12, %v1309_v26 }
 0x4e5   : > { %2246 = vmatprep.mubr.bf16.mxu1 %v1608_v2  ;;  %v1334_v7 = vpop.permute.xlu0 %1333 }
 0x4e6   : > { %v2423_v47 = vpop.eup %2422  ;;  %2430 = vpow2.f32 %v1387_v3  ;;  %v1381_v56 = vmul.f32 1.442695, %v1358_v5  ;;  %v1363_v20 = vsub.f32 %v3018_v53, %v1334_v7  ;;  %v1267_v3 = vmul.f32 1.442695, %v1237_v13 }
 0x4e7   : > { %v1319_v59 = vpop.permute.xlu1 %1318  ;;  %1437 = vadd.xlane.f32.xlu0 %v2423_v47  ;;  %v1609_v14 = vpack.c.bf16 %v2423_v47, %v2419_v34 }
 0x4e8   : > { %v2425_v49 = vpop.eup %2424  ;;  %2432 = vpow2.f32 %v1381_v56  ;;  %v1360_v48 = vsub.f32 %v3012_v51, %v1319_v59  ;;  %v1391_v29 = vmul.f32 1.442695, %v1363_v20  ;;  %v1401_v20 = vld [vmem:[#allocation4 + $0x10] sm:$0xff] }
 0x4e9   : > { %2247 = vmatmul.mubr.bf16.vlgmr.msra.gmra.mrb[4].mxu1 %v1609_v14  ;;  %1443 = vadd.xlane.f32.xlu1 %v2425_v49  ;;  %v1344_v19 = vpop.permute.xlu0 %1343  ;;  %2434 = vpow2.f32 %v1383_v9  ;;  %v2427_v25 = vpop.eup %2426 }
 0x4ea   : > { %v1385_v12 = vmul.f32 1.442695, %v1360_v48  ;;  %v1365_v0 = vsub.f32 %v3016_v52, %v1344_v19  ;;  %v1400_v48 = vld [vmem:[#allocation4 + $0x8] sm:$0xff] }
 0x4eb   : > { %v1329_v24 = vpop.permute.xlu1 %1328 }
 0x4ec   : > { %2436 = vpow2.f32 %v1385_v12  ;;  %v1395_v18 = vmul.f32 1.442695, %v1365_v0  ;;  %v1362_v44 = vsub.f32 %v3010_v50, %v1329_v24  ;;  %v1416_v12 = vmul.f32 %v3140_v61, %v1400_v48 }
 0x4ed   : > { %1439 = vadd.xlane.f32.xlu1 %v2427_v25  ;;  %v3232_v7 = vpop.permute.xlu0 %1519 }
 0x4ee   : > { %v2429_v28 = vpop.eup %2428  ;;  %2438 = vpow2.f32 %v1395_v18  ;;  %v1389_v51 = vmul.f32 1.442695, %v1362_v44  ;;  %v1399_v44 = vld [vmem:[#allocation4] sm:$0xff] }
 0x4ef   : > { %v1339_v41 = vpop.permute.xlu1 %1338  ;;  %v1610_v30 = vpack.c.bf16 %v2429_v28, %v2427_v25  ;;  %v1417_v25 = vmul.f32 %v3165_v36, %v1401_v20 }
 0x4f0   : > { %v2431_v6 = vpop.eup %2430  ;;  %2440 = vpow2.f32 %v1389_v51  ;;  %v1364_v53 = vsub.f32 %v3024_v55, %v1339_v41  ;;  %v1402_v41 = vld [vmem:[#allocation4 + $0x18] sm:$0xff] }
 0x4f1   : > { %2250 = vmatprep.mubr.bf16.mxu1 %v1610_v30  ;;  %1451 = vadd.xlane.f32.xlu1 %v2431_v6  ;;  %2442 = vpow2.f32 %v1391_v29  ;;  %v3236_v9 = vpop.permute.xlu0 %1534  ;;  %v1415_v29 = vmul.f32 %v3157_v33, %v1399_v44  ;;  %v1418_v61 = vmul.f32 %v3173_v38, %v1402_v41 }
 0x4f2   : > { %v2433_v52 = vpop.eup %2432  ;;  %v1393_v31 = vmul.f32 1.442695, %v1364_v53 }
 0x4f3   : > { %1445 = vadd.xlane.f32.xlu0 %v2433_v52  ;;  %v1349_v42 = vpop.permute.xlu1 %1348  ;;  %v1611_v16 = vpack.c.bf16 %v2433_v52, %v2425_v49  ;;  %v2435_v50 = vpop.eup %2434 }
 0x4f4   : > { %2444 = vpow2.f32 %v1393_v31  ;;  %v1366_v34 = vsub.f32 %v3022_v54, %v1349_v42  ;;  %v1269_v54 = vmul.f32 1.442695, %v1238_v21  ;;  %v1403_v42 = vld [vmem:[#allocation4 + $0x20] sm:$0xff] }
 0x4f5   : > { %2251 = vmatmul.mubr.bf16.gmra.mrb[8].mxu1 %v1611_v16  ;;  %1447 = vadd.xlane.f32.xlu1 %v2435_v50  ;;  %v3240_v4 = vpop.permute.xlu0 %1544  ;;  %v1419_v33 = vmul.f32 %v3146_v23, %v1403_v42  ;;  %v1497_v42 = vld [vmem:[#allocation5 + $0x8] sm:$0xff] }
 0x4f6   : > { %v2437_v22 = vpop.eup %2436  ;;  %v1397_v43 = vmul.f32 1.442695, %v1366_v34  ;;  %v1409_v34 = vld [vmem:[#allocation4 + $0x50] sm:$0xff] }
 0x4f7   : > { %1441 = vadd.xlane.f32.xlu0 %v2429_v28  ;;  %v1612_v37 = vpack.c.bf16 %v2437_v22, %v2435_v50  ;;  %v3226_v15 = vpop.permute.xlu1 %1514  ;;  %v1425_v38 = vmul.f32 %v3160_v10, %v1409_v34 }
 0x4f8   : > { %v2439_v46 = vpop.eup %2438  ;;  %2446 = vpow2.f32 %v1397_v43  ;;  %v1406_v43 = vld [vmem:[#allocation4 + $0x38] sm:$0xff] }
 0x4f9   : > { %2254 = vmatprep.mubr.bf16.mxu1 %v1612_v37  ;;  %1459 = vadd.xlane.f32.xlu1 %v2439_v46  ;;  %2448 = vpow2.f32 %v1269_v54  ;;  %v3244_v56 = vpop.permute.xlu0 %1564 }
 0x4fa   : > { %v2441_v55 = vpop.eup %2440  ;;  %2450 = vpow2.f32 %v1267_v3  ;;  %v1410_v3 = vld [vmem:[#allocation4 + $0x58] sm:$0xff] }
 0x4fb   : > { %1453 = vadd.xlane.f32.xlu0 %v2441_v55  ;;  %v1613_v45 = vpack.c.bf16 %v2441_v55, %v2431_v6  ;;  %v2443_v39 = vpop.eup %2442  ;;  %v3228_v21 = vpop.permute.xlu1 %1524  ;;  %v1405_v6 = vld [vmem:[#allocation4 + $0x30] sm:$0xff]  ;;  %v1422_v55 = vmul.f32 %v3184_v32, %v1406_v43  ;;  %v1593_v43 = vmul.f32 %v3232_v7, %v1497_v42 }
 0x4fc   : > { %v1421_v36 = vmul.f32 %v3152_v1, %v1405_v6  ;;  %v1412_v6 = vld [vmem:[#allocation4 + $0x68] sm:$0xff] }
 0x4fd   : > { %2255 = vmatmul.mubr.bf16.gmra.mrb[12].mxu1 %v1613_v45  ;;  %1455 = vadd.xlane.f32.xlu1 %v2443_v39  ;;  %v3248_v14 = vpop.permute.xlu0 %1554 }
 0x4fe   : > { %v2445_v8 = vpop.eup %2444 }
 0x4ff   : > { %1449 = vadd.xlane.f32.xlu0 %v2437_v22  ;;  %v1614_v40 = vpack.c.bf16 %v2445_v8, %v2443_v39  ;;  %v3230_v5 = vpop.permute.xlu1 %1529  ;;  %v1404_v39 = vld [vmem:[#allocation4 + $0x28] sm:$0xff] }
 0x501   : > { %2258 = vmatprep.mubr.bf16.mxu1 %v1614_v40  ;;  %v3252_v19 = vpop.permute.xlu0 %1574  ;;  %v1413_v40 = vld [vmem:[#allocation4 + $0x70] sm:$0xff] }
 0x502   : > { %v2447_v27 = vpop.eup %2446 }
 0x503   : > { %1461 = vadd.xlane.f32.xlu0 %v2447_v27  ;;  %v1615_v26 = vpack.c.bf16 %v2447_v27, %v2439_v46  ;;  %v3217_v2 = vpop.eup %2448  ;;  %v3234_v47 = vpop.permute.xlu1 %1539  ;;  %v1407_v46 = vld [vmem:[#allocation4 + $0x40] sm:$0xff] }
 0x504   : > { %v3223_v11 = vpop.eup %2450  ;;  %v1423_v23 = vmul.f32 %v3168_v17, %v1407_v46  ;;  %v1426_v17 = vmul.f32 %v3187_v58, %v1410_v3 }
 0x505   : > { %2259 = vmatmul.mubr.bf16.gmra.mrb[16].mxu1 %v1615_v26  ;;  %v1420_v26 = vmul.f32 %v3181_v57, %v1404_v39  ;;  %v1429_v32 = vmul.f32 %v3223_v11, %v1413_v40 }
 0x507   : > { %1457 = vadd.xlane.f32.xlu0 %v2445_v8  ;;  %v3238_v60 = vpop.permute.xlu1 %1549 }
 0x50b   : > { %v3242_v13 = vpop.permute.xlu1 %1569 }
 0x50e   : > { %1589 = vperm.xlu1 %2378, %v3217_v2  }
 0x50f   : > { %v3246_v59 = vpop.permute.xlu1 %1559 }
 0x513   : > { %v3250_v49 = vpop.permute.xlu1 %1579 }
 0x51d   : > { %1584 = vperm.xlu0 %2377, %v3223_v11  }
 0x56a   : > { %v1434_v0 = vpop.xlane.xlu1 %1433 }
 0x56b   : > { %v1464_v24 = vadd.f32 %v1434_v0, %v1416_v12  ;;  %v1411_v12 = vld [vmem:[#allocation4 + $0x60] sm:$0xff] }
 0x56c   : > { %v1436_v18 = vpop.xlane.xlu0 %1435  ;;  %v1427_v57 = vmul.f32 %v3176_v35, %v1411_v12  ;;  %v1428_v35 = vmul.f32 %v3193_v62, %v1412_v6 }
 0x56d   : > { %1481 = vst.msk [vmem:[#allocation4 + $0x8] sm:$0xff] %vm1479_vm4, %v1464_v24  ;;  %v1465_v28 = vadd.f32 %v1436_v18, %v1417_v25  ;;  %v1408_v25 = vld [vmem:[#allocation4 + $0x48] sm:$0xff] }
 0x56e   : > { %v1424_v11 = vmul.f32 %v3190_v63, %v1408_v25  ;;  %v1498_v63 = vld [vmem:[#allocation5 + $0x10] sm:$0xff] }
 0x56f   : > { %1482 = vst.msk [vmem:[#allocation4 + $0x10] sm:$0xff] %vm1479_vm4, %v1465_v28 }
 0x570   : > { %v1432_v51 = vpop.xlane.xlu0 %1431 }
 0x571   : > { %v1463_v30 = vadd.f32 %v1432_v51, %v1415_v29  ;;  %v1414_v51 = vld [vmem:[#allocation4 + $0x78] sm:$0xff] }
 0x572   : > { %v1430_v58 = vmul.f32 %v3217_v2, %v1414_v51  ;;  %v1508_v51 = vld [vmem:[#allocation5 + $0x60] sm:$0xff] }
 0x573   : > { %1480 = vst.msk [vmem:[#allocation4] sm:$0xff] %vm1479_vm4, %v1463_v30 }
 0x574   : > { %v1438_v53 = vpop.xlane.xlu0 %1437 }
 0x575   : > { %v1466_v52 = vadd.f32 %v1438_v53, %v1418_v61 }
 0x576   : > { %v1444_v31 = vpop.xlane.xlu1 %1443 }
 0x577   : > { %1483 = vst.msk [vmem:[#allocation4 + $0x18] sm:$0xff] %vm1479_vm4, %v1466_v52  ;;  %v1469_v16 = vadd.f32 %v1444_v31, %v1421_v36  ;;  %v1496_v36 = vld [vmem:[#allocation5] sm:$0xff]  ;;  %v1499_v31 = vld [vmem:[#allocation5 + $0x18] sm:$0xff] }
 0x579   : > { %1486 = vst.msk [vmem:[#allocation4 + $0x30] sm:$0xff] %vm1479_vm4, %v1469_v16  ;;  %v1594_v16 = vmul.f32 %v3228_v21, %v1498_v63  ;;  %v1500_v21 = vld [vmem:[#allocation5 + $0x20] sm:$0xff] }
 0x57a   : > { %v1440_v50 = vpop.xlane.xlu1 %1439  ;;  %v1596_v7 = vmul.f32 %v3236_v9, %v1500_v21  ;;  %v1507_v9 = vld [vmem:[#allocation5 + $0x58] sm:$0xff] }
 0x57b   : > { %v1467_v22 = vadd.f32 %v1440_v50, %v1419_v33  ;;  %v1592_v33 = vmul.f32 %v3226_v15, %v1496_v36  ;;  %v1595_v50 = vmul.f32 %v3230_v5, %v1499_v31  ;;  %v1502_v15 = vld [vmem:[#allocation5 + $0x30] sm:$0xff]  ;;  %v1503_v5 = vld [vmem:[#allocation5 + $0x38] sm:$0xff] }
 0x57d   : > { %1484 = vst.msk [vmem:[#allocation4 + $0x20] sm:$0xff] %vm1479_vm4, %v1467_v22 }
 0x57e   : > { %v1452_v37 = vpop.xlane.xlu1 %1451 }
 0x57f   : > { %v1473_v1 = vadd.f32 %v1452_v37, %v1425_v38 }
 0x580   : > { %v1446_v45 = vpop.xlane.xlu0 %1445 }
 0x581   : > { %1490 = vst.msk [vmem:[#allocation4 + $0x50] sm:$0xff] %vm1479_vm4, %v1473_v1  ;;  %v1470_v8 = vadd.f32 %v1446_v45, %v1422_v55  ;;  %v1598_v55 = vmul.f32 %v3240_v4, %v1502_v15  ;;  %v1501_v45 = vld [vmem:[#allocation5 + $0x28] sm:$0xff] }
 0x582   : > { %v1448_v54 = vpop.xlane.xlu1 %1447  ;;  %v1597_v40 = vmul.f32 %v3234_v47, %v1501_v45 }
 0x583   : > { %1487 = vst.msk [vmem:[#allocation4 + $0x38] sm:$0xff] %vm1479_vm4, %v1470_v8  ;;  %v1471_v27 = vadd.f32 %v1448_v54, %v1423_v23  ;;  %v1599_v8 = vmul.f32 %v3238_v60, %v1503_v5 }
 0x584   : > { %v1442_v10 = vpop.xlane.xlu0 %1441 }
 0x585   : > { %1488 = vst.msk [vmem:[#allocation4 + $0x40] sm:$0xff] %vm1479_vm4, %v1471_v27  ;;  %v1468_v48 = vadd.f32 %v1442_v10, %v1420_v26 }
 0x586   : > { %v1460_v20 = vpop.xlane.xlu1 %1459 }
 0x587   : > { %1485 = vst.msk [vmem:[#allocation4 + $0x28] sm:$0xff] %vm1479_vm4, %v1468_v48  ;;  %v1477_v0 = vadd.f32 %v1460_v20, %v1429_v32  ;;  %v1506_v48 = vld [vmem:[#allocation5 + $0x50] sm:$0xff]  ;;  %v1504_v32 = vld [vmem:[#allocation5 + $0x40] sm:$0xff]  ;;  %v1505_v20 = vld [vmem:[#allocation5 + $0x48] sm:$0xff] }
 0x588   : > { %v1454_v24 = vpop.xlane.xlu0 %1453  ;;  %v1602_v60 = vmul.f32 %v3244_v56, %v1506_v48  ;;  %v1600_v47 = vmul.f32 %v3248_v14, %v1504_v32  ;;  %v1601_v25 = vmul.f32 %v3246_v59, %v1505_v20  ;;  %v1511_v14 = vld [vmem:[#allocation5 + $0x78] sm:$0xff] }
 0x589   : > { %1494 = vst.msk [vmem:[#allocation4 + $0x70] sm:$0xff] %vm1479_vm4, %v1477_v0  ;;  %v1474_v18 = vadd.f32 %v1454_v24, %v1426_v17  ;;  %v1603_v0 = vmul.f32 %v3242_v13, %v1507_v9 }
 0x58a   : > { %v1456_v44 = vpop.xlane.xlu1 %1455 }
 0x58b   : > { %1491 = vst.msk [vmem:[#allocation4 + $0x58] sm:$0xff] %vm1479_vm4, %v1474_v18  ;;  %v1475_v28 = vadd.f32 %v1456_v44, %v1427_v57 }
 0x58c   : > { %v1450_v29 = vpop.xlane.xlu0 %1449 }
 0x58d   : > { %1492 = vst.msk [vmem:[#allocation4 + $0x60] sm:$0xff] %vm1479_vm4, %v1475_v28  ;;  %v1472_v41 = vadd.f32 %v1450_v29, %v1424_v11  ;;  %v1510_v11 = vld [vmem:[#allocation5 + $0x70] sm:$0xff] }
 0x58e   : > { %v1590_v13 = vpop.permute.xlu1 %1589 }
 0x58f   : > { %1489 = vst.msk [vmem:[#allocation4 + $0x48] sm:$0xff] %vm1479_vm4, %v1472_v41  ;;  %v1509_v41 = vld [vmem:[#allocation5 + $0x68] sm:$0xff]  ;;  %v1607_v6 = vmul.f32 %v1590_v13, %v1511_v14 }
 0x590   : > { %v1462_v30 = vpop.xlane.xlu0 %1461 }
 0x591   : > { %v1478_v61 = vadd.f32 %v1462_v30, %v1430_v58  ;;  %v1604_v58 = vmul.f32 %v3252_v19, %v1508_v51  ;;  %v1768_v19 = vld [vmem:[#allocation4 + $0x10] sm:$0xff] (!%p2119_p6) }
 0x592   : > { %2454 = vrcp.f32 (!%p2119_p6), %v1768_v19  ;;  %v1777_v21 = vld [vmem:[#allocation4 + $0x58] sm:$0xff] (!%p2119_p6) }
 0x593   : > { %1495 = vst.msk [vmem:[#allocation4 + $0x78] sm:$0xff] %vm1479_vm4, %v1478_v61 }
 0x594   : > { %v1458_v53 = vpop.xlane.xlu0 %1457 }
 0x595   : > { %v1476_v52 = vadd.f32 %v1458_v53, %v1428_v35  ;;  %v1605_v53 = vmul.f32 %v3250_v49, %v1509_v41  ;;  %v2619_v49 = vmov (!%p2119_p6), 0  }
 0x596   : > { %2453 = vset.pattern.permute.xlu1 (!%p2119_p6), %v2619_v49  ;;  %2452 = vset.pattern.permute.xlu0 (!%p2119_p6), %v2619_v49 }
 0x597   : > { %1493 = vst.msk [vmem:[#allocation4 + $0x68] sm:$0xff] %vm1479_vm4, %v1476_v52 }
 0x59c   : > { %v1585_v29 = vpop.permute.xlu0 %1584 }
 0x59d   : > { %v1606_v59 = vmul.f32 %v1585_v29, %v1510_v11 }
 0x5bc   : > { %v2248_v2 = vpop.f32.mrb[4].mxu1 }
 0x5bd   : > { %v1716_v34 = vadd.f32 %v2248_v2, %v1594_v16  ;;  %v1651_v22 = vpop.f32.mrb[5].mxu1  ;;  %v1766_v16 = vld [vmem:[#allocation4] sm:$0xff] (!%p2119_p6)  ;;  %v1767_v2 = vld [vmem:[#allocation4 + $0x8] sm:$0xff] (!%p2119_p6) }
 0x5be   : > { %v1714_v62 = vadd.f32 %v1651_v22, %v1592_v33  ;;  %v2249_v38 = vpop.f32.mrb[6].mxu1  ;;  %v1769_v33 = vld [vmem:[#allocation4 + $0x18] sm:$0xff] (!%p2119_p6)  ;;  %2456 = vrcp.f32 (!%p2119_p6), %v1766_v16 }
 0x5bf   : > { %1732 = vst.msk [vmem:[#allocation5 + $0x10] sm:$0xff] %vm861_vm2, %v1716_v34  ;;  %v1717_v37 = vadd.f32 %v2249_v38, %v1595_v50  ;;  %v1654_v46 = vpop.f32.mrb[7].mxu1  ;;  %2458 = vrcp.f32 (!%p2119_p6), %v1769_v33  ;;  %v1771_v50 = vld [vmem:[#allocation4 + $0x28] sm:$0xff] (!%p2119_p6)  ;;  %v1770_v34 = vld [vmem:[#allocation4 + $0x20] sm:$0xff] (!%p2119_p6)  ;;  %v1773_v22 = vld [vmem:[#allocation4 + $0x38] sm:$0xff] (!%p2119_p6) }
 0x5c0   : > { %1730 = vst.msk [vmem:[#allocation5] sm:$0xff] %vm861_vm2, %v1714_v62  ;;  %v1715_v1 = vadd.f32 %v1654_v46, %v1593_v43  ;;  %2460 = vrcp.f32 (!%p2119_p6), %v1767_v2  ;;  %v1772_v43 = vld [vmem:[#allocation4 + $0x30] sm:$0xff] (!%p2119_p6)  ;;  %v2455_v62 = vpop.eup (!%p2119_p6), %2454 }
 0x5c1   : > { %1733 = vst.msk [vmem:[#allocation5 + $0x18] sm:$0xff] %vm861_vm2, %v1717_v37  ;;  %2462 = vrcp.f32 (!%p2119_p6), %v1771_v50  ;;  %1826 = vperm.xlu1 (!%p2119_p6), %2453, %v2455_v62   ;;  %v1775_v37 = vld [vmem:[#allocation4 + $0x48] sm:$0xff] (!%p2119_p6) }
 0x5c2   : > { %1731 = vst.msk [vmem:[#allocation5 + $0x8] sm:$0xff] %vm861_vm2, %v1715_v1  ;;  %2464 = vrcp.f32 (!%p2119_p6), %v1770_v34  ;;  %v1774_v1 = vld [vmem:[#allocation4 + $0x40] sm:$0xff] (!%p2119_p6) }
 0x5c3   : > { %2466 = vrcp.f32 (!%p2119_p6), %v1773_v22 }
 0x5c4   : > { %2468 = vrcp.f32 (!%p2119_p6), %v1772_v43 }
 0x5c5   : > { %2470 = vrcp.f32 (!%p2119_p6), %v1775_v37 }
 0x5c6   : > { %2472 = vrcp.f32 (!%p2119_p6), %v1774_v1 }
 0x5c7   : > { %2474 = vrcp.f32 (!%p2119_p6), %v1777_v21 }
 0x5c8   : > { %v2252_v39 = vpop.f32.mrb[8].mxu1  ;;  %v2457_v38 = vpop.eup (!%p2119_p6), %2456 }
 0x5c9   : > { %v1720_v23 = vadd.f32 %v2252_v39, %v1598_v55  ;;  %v1667_v54 = vpop.f32.mrb[9].mxu1  ;;  %v2459_v46 = vpop.eup (!%p2119_p6), %2458  ;;  %1816 = vperm.xlu0 (!%p2119_p6), %2452, %v2457_v38   ;;  %v1776_v55 = vld [vmem:[#allocation4 + $0x50] sm:$0xff] (!%p2119_p6) }
 0x5ca   : > { %v1718_v27 = vadd.f32 %v1667_v54, %v1596_v7  ;;  %v2253_v26 = vpop.f32.mrb[10].mxu1  ;;  %v2461_v15 = vpop.eup (!%p2119_p6), %2460  ;;  %1831 = vperm.xlu1 (!%p2119_p6), %2453, %v2459_v46   ;;  %2476 = vrcp.f32 (!%p2119_p6), %v1776_v55  ;;  %v1779_v7 = vld [vmem:[#allocation4 + $0x68] sm:$0xff] (!%p2119_p6)  ;;  %v1781_v54 = vld [vmem:[#allocation4 + $0x78] sm:$0xff] (!%p2119_p6)  ;;  %v1943_v55 = vstv (!%p2119_p6), %s1910_s16 }
 0x5cb   : > { %1736 = vst.msk [vmem:[#allocation5 + $0x30] sm:$0xff] %vm861_vm2, %v1720_v23  ;;  %v1721_v10 = vadd.f32 %v2253_v26, %v1599_v8  ;;  %v1670_v3 = vpop.f32.mrb[11].mxu1  ;;  %v2463_v5 = vpop.eup (!%p2119_p6), %2462  ;;  %v1778_v8 = vld [vmem:[#allocation4 + $0x60] sm:$0xff] (!%p2119_p6)  ;;  %2478 = vrcp.f32 (!%p2119_p6), %v1779_v7 }
 0x5cc   : > { %1734 = vst.msk [vmem:[#allocation5 + $0x20] sm:$0xff] %vm861_vm2, %v1718_v27  ;;  %v1719_v4 = vadd.f32 %v1670_v3, %v1597_v40  ;;  %v2465_v45 = vpop.eup (!%p2119_p6), %2464  ;;  %2480 = vrcp.f32 (!%p2119_p6), %v1778_v8  ;;  %v1780_v27 = vld [vmem:[#allocation4 + $0x70] sm:$0xff] (!%p2119_p6) }
 0x5cd   : > { %1737 = vst.msk [vmem:[#allocation5 + $0x38] sm:$0xff] %vm861_vm2, %v1721_v10  ;;  %1821 = vperm.xlu0 (!%p2119_p6), %2452, %v2461_v15   ;;  %v2467_v39 = vpop.eup (!%p2119_p6), %2466  ;;  %2482 = vrcp.f32 (!%p2119_p6), %v1781_v54 }
 0x5ce   : > { %1735 = vst.msk [vmem:[#allocation5 + $0x28] sm:$0xff] %vm861_vm2, %v1719_v4  ;;  %1841 = vperm.xlu1 (!%p2119_p6), %2453, %v2463_v5   ;;  %v2469_v23 = vpop.eup (!%p2119_p6), %2468  ;;  %2484 = vrcp.f32 (!%p2119_p6), %v1780_v27 }
 0x5cf   : > { %v2471_v40 = vpop.eup (!%p2119_p6), %2470 }
 0x5d0   : > { %v2256_v12 = vpop.f32.mrb[12].mxu1  ;;  %v2473_v26 = vpop.eup (!%p2119_p6), %2472 }
 0x5d1   : > { %v1724_v17 = vadd.f32 %v2256_v12, %v1602_v60  ;;  %v1683_v24 = vpop.f32.mrb[13].mxu1  ;;  %1836 = vperm.xlu0 (!%p2119_p6), %2452, %v2465_v45   ;;  %v2475_v10 = vpop.eup (!%p2119_p6), %2474  ;;  %v1798_v60 = vld [vmem:[#allocation5] sm:$0xff] (!%p2119_p6)  ;;  %v1799_v12 = vld [vmem:[#allocation5 + $0x8] sm:$0xff] (!%p2119_p6) }
 0x5d2   : > { %v1722_v18 = vadd.f32 %v1683_v24, %v1600_v47  ;;  %v2257_v57 = vpop.f32.mrb[14].mxu1  ;;  %1851 = vperm.xlu1 (!%p2119_p6), %2453, %v2467_v39   ;;  %v1804_v41 = vld [vmem:[#allocation5 + $0x30] sm:$0xff] (!%p2119_p6) }
 0x5d3   : > { %1740 = vst.msk [vmem:[#allocation5 + $0x50] sm:$0xff] %vm861_vm2, %v1724_v17  ;;  %v1725_v44 = vadd.f32 %v2257_v57, %v1603_v0  ;;  %v1686_v28 = vpop.f32.mrb[15].mxu1  ;;  %v1800_v0 = vld [vmem:[#allocation5 + $0x10] sm:$0xff] (!%p2119_p6)  ;;  %v1801_v57 = vld [vmem:[#allocation5 + $0x18] sm:$0xff] (!%p2119_p6)  ;;  %v1802_v11 = vld [vmem:[#allocation5 + $0x20] sm:$0xff] (!%p2119_p6) }
 0x5d4   : > { %1738 = vst.msk [vmem:[#allocation5 + $0x40] sm:$0xff] %vm861_vm2, %v1722_v18  ;;  %v1723_v56 = vadd.f32 %v1686_v28, %v1601_v25  ;;  %v2477_v3 = vpop.eup (!%p2119_p6), %2476  ;;  %v1946_v45 = vld [vmem:[%s2818_s17] sm:$0xff] (!%p2119_p6) }
 0x5d5   : > { %1741 = vst.msk [vmem:[#allocation5 + $0x58] sm:$0xff] %vm861_vm2, %v1725_v44  ;;  %1846 = vperm.xlu0 (!%p2119_p6), %2452, %v2469_v23   ;;  %v2479_v48 = vpop.eup (!%p2119_p6), %2478  ;;  %v1803_v51 = vld [vmem:[#allocation5 + $0x28] sm:$0xff] (!%p2119_p6) }
 0x5d6   : > { %1739 = vst.msk [vmem:[#allocation5 + $0x48] sm:$0xff] %vm861_vm2, %v1723_v56  ;;  %1861 = vperm.xlu1 (!%p2119_p6), %2453, %v2471_v40   ;;  %v2481_v4 = vpop.eup (!%p2119_p6), %2480  ;;  %v1947_v23 = vld [vmem:[%s2818_s17 + $0x8] sm:$0xff] (!%p2119_p6) }
 0x5d7   : > { %v2483_v32 = vpop.eup (!%p2119_p6), %2482 }
 0x5d8   : > { %v2260_v30 = vpop.f32.mrb[16].mxu1  ;;  %1765 = sbr.rel (%p2119_p6) target bundleno = 1749 (0x6d5), region = 140  ;;  %v2485_v9 = vpop.eup (!%p2119_p6), %2484 }
 0x5d9   : > { %v1728_v61 = vadd.f32 %v2260_v30, %v1606_v59  ;;  %v1699_v35 = vpop.f32.mrb[17].mxu1  ;;  %1856 = vperm.xlu0 (!%p2119_p6), %2452, %v2473_v26   ;;  %v1805_v30 = vld [vmem:[#allocation5 + $0x38] sm:$0xff] (!%p2119_p6) }
 0x5da   : > { %v1726_v52 = vadd.f32 %v1699_v35, %v1604_v58  ;;  %v2261_v63 = vpop.f32.mrb[18].mxu1  ;;  %1871 = vperm.xlu1 (!%p2119_p6), %2453, %v2475_v10  }
 0x5db   : > { %1744 = vst.msk [vmem:[#allocation5 + $0x70] sm:$0xff] %vm861_vm2, %v1728_v61  ;;  %v1729_v36 = vadd.f32 %v2261_v63, %v1607_v6  ;;  %v1702_v31 = vpop.f32.mrb[19].mxu1  ;;  %v1806_v35 = vld [vmem:[#allocation5 + $0x40] sm:$0xff] (!%p2119_p6) }
 0x5dc   : > { %1742 = vst.msk [vmem:[#allocation5 + $0x60] sm:$0xff] %vm861_vm2, %v1726_v52  ;;  %v1727_v42 = vadd.f32 %v1702_v31, %v1605_v53  ;;  %v1809_v33 = vld [vmem:[#allocation5 + $0x58] sm:$0xff] (!%p2119_p6) }
 0x5dd   : > { %1745 = vst.msk [vmem:[#allocation5 + $0x78] sm:$0xff] %vm861_vm2, %v1729_v36  ;;  %1866 = vperm.xlu0 (!%p2119_p6), %2452, %v2477_v3   ;;  %v1807_v63 = vld [vmem:[#allocation5 + $0x48] sm:$0xff] (!%p2119_p6) }
 0x5de   : > { %1743 = vst.msk [vmem:[#allocation5 + $0x68] sm:$0xff] %vm861_vm2, %v1727_v42  ;;  %1881 = vperm.xlu1 (!%p2119_p6), %2453, %v2479_v48   ;;  %v1808_v42 = vld [vmem:[#allocation5 + $0x50] sm:$0xff] (!%p2119_p6) }
 0x5e1   : > { %1876 = vperm.xlu0 %2452, %v2481_v4  }
 0x5e2   : > { %1891 = vperm.xlu1 %2453, %v2483_v32   ;;  %v1812_v37 = vld [vmem:[#allocation5 + $0x70] sm:$0xff] }
 0x5e3   : > { %v1810_v50 = vld [vmem:[#allocation5 + $0x60] sm:$0xff] }
 0x5e4   : > { %v1813_v15 = vld [vmem:[#allocation5 + $0x78] sm:$0xff] }
 0x5e5   : > { %1886 = vperm.xlu0 %2452, %v2485_v9   ;;  %v1811_v43 = vld [vmem:[#allocation5 + $0x68] sm:$0xff] }
 0x640   : > { %v1827_v25 = vpop.permute.xlu1 %1826 }
 0x641   : > { %v1896_v18 = vmul.f32 %v1827_v25, %v1800_v0 }
 0x648   : > { %v1817_v20 = vpop.permute.xlu0 %1816 }
 0x649   : > { %v1894_v47 = vmul.f32 %v1817_v20, %v1798_v60  ;;  %v1832_v44 = vpop.permute.xlu1 %1831 }
 0x64a   : > { %v1897_v28 = vmul.f32 %v1832_v44, %v1801_v57 }
 0x64b   : > { %1911 = vxpose.xlu0.b32.start [1/16] (narrow) %v1894_v47, 16 }
 0x64c   : > { %v1822_v17 = vpop.permute.xlu0 %1821 }
 0x64d   : > { %v1895_v24 = vmul.f32 %v1822_v17, %v1799_v12  ;;  %v1842_v14 = vpop.permute.xlu1 %1841 }
 0x64e   : > { %v1899_v13 = vmul.f32 %v1842_v14, %v1803_v51 }
 0x64f   : > { %1912 = vxpose.xlu0.b32.cont [2/16] (narrow) %v1895_v24, 16 }
 0x650   : > { %v1837_v29 = vpop.permute.xlu0 %1836 }
 0x651   : > { %v1898_v56 = vmul.f32 %v1837_v29, %v1802_v11  ;;  %v1852_v6 = vpop.permute.xlu1 %1851 }
 0x652   : > { %v1901_v61 = vmul.f32 %v1852_v6, %v1805_v30 }
 0x653   : > { %1913 = vxpose.xlu0.b32.cont [3/16] (narrow) %v1896_v18, 16 }
 0x654   : > { %v1847_v59 = vpop.permute.xlu0 %1846 }
 0x655   : > { %v1900_v58 = vmul.f32 %v1847_v59, %v1804_v41  ;;  %v1862_v36 = vpop.permute.xlu1 %1861 }
 0x656   : > { %v1903_v31 = vmul.f32 %v1862_v36, %v1807_v63 }
 0x657   : > { %1914 = vxpose.xlu0.b32.cont [4/16] (narrow) %v1897_v28, 16 }
 0x658   : > { %v1857_v53 = vpop.permute.xlu0 %1856 }
 0x659   : > { %v1902_v52 = vmul.f32 %v1857_v53, %v1806_v35  ;;  %v1872_v49 = vpop.permute.xlu1 %1871 }
 0x65a   : > { %v1905_v2 = vmul.f32 %v1872_v49, %v1809_v33 }
 0x65b   : > { %1915 = vxpose.xlu0.b32.cont [5/16] (narrow) %v1898_v56, 16 }
 0x65c   : > { %v1867_v19 = vpop.permute.xlu0 %1866 }
 0x65d   : > { %v1904_v16 = vmul.f32 %v1867_v19, %v1808_v42  ;;  %v1882_v62 = vpop.permute.xlu1 %1881 }
 0x65e   : > { %v1907_v38 = vmul.f32 %v1882_v62, %v1811_v43 }
 0x65f   : > { %1916 = vxpose.xlu0.b32.cont [6/16] (narrow) %v1899_v13, 16 }
 0x660   : > { %v1877_v34 = vpop.permute.xlu0 %1876 }
 0x661   : > { %v1906_v22 = vmul.f32 %v1877_v34, %v1810_v50  ;;  %v1892_v21 = vpop.permute.xlu1 %1891 }
 0x662   : > { %v1909_v5 = vmul.f32 %v1892_v21, %v1813_v15 }
 0x663   : > { %1917 = vxpose.xlu0.b32.cont [7/16] (narrow) %v1900_v58, 16 }
 0x664   : > { %v1887_v46 = vpop.permute.xlu0 %1886 }
 0x665   : > { %v1908_v1 = vmul.f32 %v1887_v46, %v1812_v37 }
 0x667   : > { %1918 = vxpose.xlu0.b32.cont [8/16] (narrow) %v1901_v61, 16 }
 0x66b   : > { %1919 = vxpose.xlu0.b32.cont [9/16] (narrow) %v1902_v52, 16 }
 0x66f   : > { %1920 = vxpose.xlu0.b32.cont [10/16] (narrow) %v1903_v31, 16 }
 0x673   : > { %1921 = vxpose.xlu0.b32.cont [11/16] (narrow) %v1904_v16, 16 }
 0x677   : > { %1922 = vxpose.xlu0.b32.cont [12/16] (narrow) %v1905_v2, 16 }
 0x67b   : > { %1923 = vxpose.xlu0.b32.cont [13/16] (narrow) %v1906_v22, 16 }
 0x67f   : > { %1924 = vxpose.xlu0.b32.cont [14/16] (narrow) %v1907_v38, 16 }
 0x683   : > { %1925 = vxpose.xlu0.b32.cont [15/16] (narrow) %v1908_v1, 16 }
 0x687   : > { %1926 = vxpose.xlu0.b32.end [16/16] (narrow) %v1909_v5, 16 }
 0x6cb   : > { %v1927_v7 = vpop.trf.xlu0 }
 0x6cc   : > { %v1944_v39 = vmul.f32 %v1943_v55, %v1927_v7 }
 0x6ce   : > { %v1948_v8 = vadd.f32 %v1946_v45, %v1944_v39 }
 0x6cf   : > { %v1928_v54 = vpop.trf.xlu0 }
 0x6d0   : > { %1950 = vst [vmem:[%s2821_s9] sm:$0xff] %v1948_v8  ;;  %v1945_v40 = vmul.f32 %v1943_v55, %v1928_v54 }
 0x6d2   : > { %v1949_v27 = vadd.f32 %v1947_v23, %v1945_v40 }
 0x6d4   : > { %1951 = vst [vmem:[%s2821_s9 + $0x8] sm:$0xff] %v1949_v27 }
 0x6d5 PF: > { %s3432_s18 = sld [smem:[#allocation14_spill]]  ;;  %s3433_s25 = sld [smem:[#allocation13_spill]] }
 0x6d6   : > { %s1967_s8 = sshll.u32 %s2821_s9, 4  ;;  %s3434_s17 = sld [smem:[#allocation22_spill]]  ;;  %s3324_s8 = int_to_ptr.vmem [resolvable:$true] %s1967_s8 }
 0x6d7   : > { %s3333_s16 = scalar_lea.sflag [#allocation10], %s411_s10  ;;  %s2486_s0 = scalar_lea.vmem %s3324_s8, 256 }
 0x6d8   : > { %p2487_p7 = scmp.ne.s32.totalorder %s3324_s8, %s2486_s0  ;;  %s2620_s9 = smov [#allocation9]  }
 0x6da   : > { %p2488_p8 = pnand %p2487_p7, %p2776_p11 }
 0x6db   : > { %s2121_s11 = sshll.u32 %s3432_s18, 2  ;;  %s2490_s18 = sshll.u32 %s2620_s9, 4  ;;  %s2491_s18 = int_to_ptr.vmem [resolvable:$false] %s2490_s18 }
 0x6dc   : > { %s1964_s7 = sadd.s32 %s3433_s25, %s2121_s11  ;;  %s3435_s29 = smov %s3434_s17 }
 0x6dd   : > { %s2122_s27 = sshll.u32 %s1964_s7, 7  ;;  %p2489_p9 = pneg %p2488_p8 }
 0x6de   : > { %s3329_s30 = scalar_lea.hbm %s3434_s17, %s2122_s27  ;;  %s2492_s25 = scalar_lea.vmem %s2491_s18, 512 }
 0x6df   : > { %p2493_p10 = scmp.lt.s32.totalorder %s3324_s8, %s2491_s18  ;;  %p2494_p13 = scmp.lt.s32.totalorder %s2492_s25, %s2486_s0 }
 0x6e1   : > { %p2495_p0 = por %p2494_p13, %p2493_p10 }
 0x6e3   : > { %p2496_p2 = pnand %p2495_p0, %p2489_p9 }
 0x6e5   : > { %2499 = shalt.err (!%p2496_p2)
}
 0x6e6   : > { %s2500_s10 = scalar_lea.hbm %s3329_s30, 256  ;;  %s2504_s27 = scalar_lea.hbm %s3435_s29, 1024 }
 0x6e7   : > { %p2501_p1 = scmp.ne.s32.totalorder %s3329_s30, %s2500_s10  ;;  %p2505_p5 = scmp.lt.u32.totalorder %s3329_s30, %s3435_s29 }
 0x6e8   : > { %p2506_p6 = scmp.lt.u32.totalorder %s2504_s27, %s2500_s10  ;;  %p2508_p8 = scmp.lt.u32.totalorder %s2500_s10, %s3329_s30 }
 0x6e9   : > { %p2502_p3 = pnand %p2501_p1, %p2776_p11 }
 0x6ea   : > { %p2507_p7 = por %p2506_p6, %p2505_p5 }
 0x6eb   : > { %p2503_p4 = pneg %p2502_p3 }
 0x6ec   : > { %p2509_p9 = por %p2508_p8, %p2507_p7 }
 0x6ee   : > { %p2510_p10 = pnand %p2509_p9, %p2503_p4 }
 0x6f0   : > { %2513 = shalt.err (!%p2510_p10)
}
 0x6f1   : > { %s2621_s0 = smov 128   ;;  %s2622_s17 = smov 256  }
 0x6f2   : > { %s2623_s9 = smov 8  }
 0x6f3   : > { %2264 = dma.vmem_to_hbm [thread:$0]  (%p2776_p11), %s3324_s8, 256, %s3329_s30, %s3333_s16, %s2621_s0, %s2622_s17, %s2623_s9  }
 0x6f4 PF: > { %s3436_s18 = sld [smem:[#allocation12_spill]]  ;;  %p2270_p13 = scmp.ge.s32.totalorder %s2612_s21, 2 }
 0x6f6   : > { %p2267_p0 = pnand %p2270_p13, %p2780_p12 }
 0x6fa   : > { %s1982_s11 = sand.u32 1, %s3436_s18  }
 0x6fb   : > { %s1983_s10 = scalar_lea.sflag [#allocation10], %s1982_s11 }
 0x6fc   : > { %2563 = dma.done.wait (!%p2267_p0), %s1983_s10, 256  }
 0x6fd   : > { %2565 = vsyncadd (!%p2267_p0), %s1983_s10, 4294967040  ;;  %s23_s21 = sadd.s32 1, %s2612_s21   ;;  %s3438_s17 = sld [smem:[#allocation15_spill]] }
 0x6fe   : > { %p20_p2 = scmp.ge.s32.totalorder %s23_s21, 10   ;;  %s3439_s24 = sld [smem:[#allocation16_spill]] }
 0x6ff   : > { %s3440_s8 = sld [smem:[#allocation17_spill]]  ;;  %s3441_s30 = sld [smem:[#allocation18_spill]] }
 0x700   : > { %s3442_s11 = smov %s2580_s14  ;;  %s3443_s12 = smov %s2576_s13 }
 0x701   : > { %s3444_s13 = smov %s2791_s23  ;;  %s3445_s14 = smov %s2584_s15 }
 0x702   : > { %s3446_s15 = smov %s2788_s22  ;;  %s3447_s16 = smov %s2600_s19 }
 0x703   : > { %s3448_s18 = smov %s2608_s20  ;;  %22 = sbr.rel (!%p20_p2) target bundleno = 12 (0xc), region = 188 }
 0x704   : > { %s3449_s19 = smov %s3439_s24 }
 0x705   : > { %s3450_s20 = smov %s3441_s30 }
 0x70a   :  { %1988 = vsyncpa [#allocation10], 1 }
 0x70b   :  { %1990 = vsyncpa [#allocation10 + $0x1], 1 }

</bundles_post_ra>
